<compile_context>
chip_gen: v5e
topology: v5e:2x2
jax: 0.10.0
libtpu: 0.0.40
codegen_flags: <defaults>
</compile_context>

<pallas_src>
import jax
import jax.numpy as jnp
from jax import lax
from jax.experimental import pallas as pl
from jax.experimental.pallas import tpu as pltpu


def attention_head_kernel(x_ref, w1_ref, b1_ref, w2_ref, o_ref):
    TB, S, H = x_ref.shape

    x3 = x_ref[...]                               # (TB, S, H), f32
    x2 = x3.reshape(TB * S, H)                    # fill the MXU M-dim with TB*S rows

    # att[0]: Linear(H, H) + Tanh  (MXU matmul, f32 accumulate; tanh on EUP).
    h = jnp.dot(x2, w1_ref[...],
                preferred_element_type=jnp.float32,
                precision=lax.Precision.HIGHEST)  # (TB*S, H)
    h = jnp.tanh(h + b1_ref[...])                 # b1 is (1, H), broadcasts over rows

    # att[2]: Linear(H, 1) -- N=1 matmul wastes the MXU; VPU multiply + lane reduce,
    # done on the 2D activation so only the tiny score vector gets reshaped.
    scores2 = jnp.sum(h * w2_ref[...], axis=-1, keepdims=True)   # (TB*S, 1)
    scores = scores2.reshape(TB, S, 1)                           # (TB, S, 1), ~free
    # NOTE: the scalar bias b2 is intentionally omitted -- softmax over the sequence
    # axis is shift-invariant to a per-row constant, so the result is unchanged.

    # att[3]: Softmax over the sequence axis (axis=1), per batch row.
    m = jnp.max(scores, axis=1, keepdims=True)                   # (TB, 1, 1)
    e = jnp.exp(scores - m)                                      # (TB, S, 1)
    denom = jnp.sum(e, axis=1, keepdims=True)                    # (TB, 1, 1)
    att = e / denom                                              # exact: TB scalars only

    # feature = sum_s att * x  -> (TB, H).  S is small; VPU multiply + sublane
    # reduce is free filler here (switch to att^T @ x for large S).
    o_ref[...] = jnp.sum(att * x3, axis=1).astype(o_ref.dtype)


def attention_head(x, w1, b1, w2, b2=None, *, batch_block=None):
    """x: (B, S, H); w1: (H, H) (y = x @ w1 convention, i.e. PyTorch weight.T);
    b1: (1, H); w2: (H, 1).

    b2 is accepted for API parity with the PyTorch module but is mathematically a
    no-op under the seq-axis softmax (shift invariance), so it is not passed in.
    Returns (B, H).
    """
    B, S, H = x.shape
    del b2

    # Default: one grid step with the whole batch resident (best on 1-TC v5e/v6e
    # and at small sizes on v7x).  Pass batch_block (a multiple of 8) to shard the
    # grid across v7x's two TensorCores when per-step work exceeds ~0.35 us.
    TB = B if batch_block is None else batch_block

    # Pad B up to a multiple of the block instead of shrinking TB (keeps full
    # (8, *) tiles; padded rows are computed and dropped -- softmax of zeros is
    # finite, so no NaNs leak).
    B_pad = ((B + TB - 1) // TB) * TB
    if B_pad != B:
        x = jnp.concatenate([x, jnp.zeros((B_pad - B, S, H), x.dtype)], axis=0)

    w2_row = w2.reshape(1, H)

    out = pl.pallas_call(
        attention_head_kernel,
        out_shape=jax.ShapeDtypeStruct((B_pad, H), x.dtype),
        grid_spec=pltpu.PrefetchScalarGridSpec(
            num_scalar_prefetch=0,
            grid=(B_pad // TB,),
            in_specs=[
                pl.BlockSpec((TB, S, H), lambda b: (b, 0, 0)),   # x: TB rows per step
                pl.BlockSpec((H, H), lambda b: (0, 0)),          # W1 (resident)
                pl.BlockSpec((1, H), lambda b: (0, 0)),          # b1
                pl.BlockSpec((1, H), lambda b: (0, 0)),          # W2 as a row vector
            ],
            out_specs=pl.BlockSpec((TB, H), lambda b: (b, 0)),
        ),
        compiler_params=pltpu.CompilerParams(
            dimension_semantics=("parallel",),
        ),
    )(x, w1, b1, w2_row)

    return out[:B] if B_pad != B else out


def attention_head_ref(x, w1, b1, w2, b2):
    """Pure-JAX reference matching the PyTorch forward exactly."""
    h = jnp.tanh(jnp.einsum("bsh,hk->bsk", x, w1,
                            precision=lax.Precision.HIGHEST) + b1)          # (B, S, H)
    scores = jnp.einsum("bsh,ho->bso", h, w2,
                        precision=lax.Precision.HIGHEST) + b2               # (B, S, 1)
    att = jax.nn.softmax(scores, axis=1)                                    # over seq
    return jnp.sum(att * x, axis=1)                                         # (B, H)


if __name__ == "__main__":
    # Small shapes consistent with the module.  B=16 runs as a single grid step
    # with the whole problem (x = 16 KiB, W1 = 4 KiB) resident in VMEM.
    B, S, H = 16, 8, 32

    key = jax.random.PRNGKey(0)
    kx, kw1, kb1, kw2, kb2 = jax.random.split(key, 5)

    # Parameters stored already transposed for the y = x @ W + b convention.
    x = jax.random.normal(kx, (B, S, H), dtype=jnp.float32)
    w1 = jax.random.normal(kw1, (H, H), dtype=jnp.float32) * (1.0 / jnp.sqrt(H))
    b1 = jax.random.normal(kb1, (1, H), dtype=jnp.float32) * 0.1
    w2 = jax.random.normal(kw2, (H, 1), dtype=jnp.float32) * (1.0 / jnp.sqrt(H))
    b2 = jax.random.normal(kb2, (1, 1), dtype=jnp.float32) * 0.1

    out = attention_head(x, w1, b1, w2, b2)
    out = jax.block_until_ready(out)

    ref = attention_head_ref(x, w1, b1, w2, b2)
    assert out.shape == (B, H)
    # Exact softmax divide + matched HIGHEST-precision matmuls -> tight tolerance;
    # a real bug (wrong axis / missing tanh / dropped softmax) would be O(0.1-1) off.
    assert jnp.allclose(out, ref, atol=1e-4, rtol=1e-4), "mismatch vs reference"

    print("KERNEL_OK")
</pallas_src>

<mosaic_0001>
module attributes {stable_mosaic.version = 11 : i64} {
  func.func @attention_head_kernel(%arg0: i32, %arg1: memref<16x8x32xf32, #tpu.memory_space<vmem>>, %arg2: memref<32x32xf32, #tpu.memory_space<vmem>>, %arg3: memref<1x32xf32, #tpu.memory_space<vmem>>, %arg4: memref<1x32xf32, #tpu.memory_space<vmem>>, %arg5: memref<16x32xf32, #tpu.memory_space<vmem>>) attributes {dimension_semantics = [#tpu.dimension_semantics<parallel>], iteration_bounds = array<i64: 1>, scalar_prefetch = 0 : i64, scratch_operands = 0 : i64, tpu.core_type = #tpu.core_type<tc>, window_params = [{transform_indices = @transform_0, window_bounds = array<i64: 16, 8, 32>}, {pipeline_mode = #tpu.pipeline_mode<synchronous>, transform_indices = @transform_1, window_bounds = array<i64: 32, 32>}, {pipeline_mode = #tpu.pipeline_mode<synchronous>, transform_indices = @transform_2, window_bounds = array<i64: 1, 32>}, {pipeline_mode = #tpu.pipeline_mode<synchronous>, transform_indices = @transform_3, window_bounds = array<i64: 1, 32>}, {transform_indices = @transform_4, window_bounds = array<i64: 16, 32>}]} {
    %c0 = arith.constant 0 : index
    %c0_0 = arith.constant 0 : index
    %c0_1 = arith.constant 0 : index
    %0 = vector.load %arg1[%c0, %c0_0, %c0_1] : memref<16x8x32xf32, #tpu.memory_space<vmem>>, vector<16x8x32xf32>
    %1 = vector.shape_cast %0 : vector<16x8x32xf32> to vector<128x32xf32>
    %c0_2 = arith.constant 0 : index
    %c0_3 = arith.constant 0 : index
    %2 = vector.load %arg2[%c0_2, %c0_3] : memref<32x32xf32, #tpu.memory_space<vmem>>, vector<32x32xf32>
    %cst = arith.constant dense<0.000000e+00> : vector<128x32xf32>
    %3 = tpu.matmul %1, %2, %cst {dimension_numbers = #tpu.dot_dimension_numbers<[1], [0], [0], [1], [0, 0, 1, 1], [], []>, precision = #tpu.contract_precision<fp32>} : vector<128x32xf32>, vector<32x32xf32>, vector<128x32xf32> -> vector<128x32xf32>
    %c0_4 = arith.constant 0 : index
    %c0_5 = arith.constant 0 : index
    %4 = vector.load %arg3[%c0_4, %c0_5] : memref<1x32xf32, #tpu.memory_space<vmem>>, vector<1x32xf32>
    %5 = vector.broadcast %4 : vector<1x32xf32> to vector<128x32xf32>
    %6 = arith.addf %3, %5 : vector<128x32xf32>
    %7 = math.tanh %6 : vector<128x32xf32>
    %c0_6 = arith.constant 0 : index
    %c0_7 = arith.constant 0 : index
    %8 = vector.load %arg4[%c0_6, %c0_7] : memref<1x32xf32, #tpu.memory_space<vmem>>, vector<1x32xf32>
    %9 = vector.broadcast %8 : vector<1x32xf32> to vector<128x32xf32>
    %10 = arith.mulf %7, %9 : vector<128x32xf32>
    %cst_8 = arith.constant dense<0.000000e+00> : vector<128xf32>
    %11 = vector.multi_reduction <add>, %10, %cst_8 [1] : vector<128x32xf32> to vector<128xf32>
    %12 = vector.shape_cast %11 : vector<128xf32> to vector<128x1xf32>
    %13 = vector.shape_cast %12 : vector<128x1xf32> to vector<16x8x1xf32>
    %cst_9 = arith.constant dense<0xFF800000> : vector<16x1xf32>
    %14 = vector.multi_reduction <maximumf>, %13, %cst_9 [1] : vector<16x8x1xf32> to vector<16x1xf32>
    %15 = vector.shape_cast %14 : vector<16x1xf32> to vector<16x1x1xf32>
    %16 = vector.broadcast %15 : vector<16x1x1xf32> to vector<16x8x1xf32>
    %17 = arith.subf %13, %16 : vector<16x8x1xf32>
    %18 = math.exp %17 : vector<16x8x1xf32>
    %cst_10 = arith.constant dense<0.000000e+00> : vector<16x1xf32>
    %19 = vector.multi_reduction <add>, %18, %cst_10 [1] : vector<16x8x1xf32> to vector<16x1xf32>
    %20 = vector.shape_cast %19 : vector<16x1xf32> to vector<16x1x1xf32>
    %21 = vector.broadcast %20 : vector<16x1x1xf32> to vector<16x8x1xf32>
    %22 = arith.divf %18, %21 : vector<16x8x1xf32>
    %23 = vector.broadcast %22 : vector<16x8x1xf32> to vector<16x8x32xf32>
    %24 = arith.mulf %23, %0 : vector<16x8x32xf32>
    %cst_11 = arith.constant dense<0.000000e+00> : vector<16x32xf32>
    %25 = vector.multi_reduction <add>, %24, %cst_11 [1] : vector<16x8x32xf32> to vector<16x32xf32>
    %c0_12 = arith.constant 0 : index
    %c0_13 = arith.constant 0 : index
    %26 = vector.load %arg5[%c0_12, %c0_13] : memref<16x32xf32, #tpu.memory_space<vmem>>, vector<16x32xf32>
    tpu.vector_store %arg5[%c0_12, %c0_13], %25 {strides = array<i32>} : memref<16x32xf32, #tpu.memory_space<vmem>>, vector<16x32xf32>,
    return
  }
  func.func @transform_0(%arg0: i32) -> (i32, i32, i32) {
    %c0_i32 = arith.constant 0 : i32
    %c0_i32_0 = arith.constant 0 : i32
    %c0_i32_1 = arith.constant 0 : i32
    return %arg0, %c0_i32, %c0_i32_0 : i32, i32, i32
  }
  func.func @transform_1(%arg0: i32) -> (i32, i32) {
    %c0_i32 = arith.constant 0 : i32
    %c0_i32_0 = arith.constant 0 : i32
    %c0_i32_1 = arith.constant 0 : i32
    return %c0_i32, %c0_i32_0 : i32, i32
  }
  func.func @transform_2(%arg0: i32) -> (i32, i32) {
    %c0_i32 = arith.constant 0 : i32
    %c0_i32_0 = arith.constant 0 : i32
    %c0_i32_1 = arith.constant 0 : i32
    return %c0_i32, %c0_i32_0 : i32, i32
  }
  func.func @transform_3(%arg0: i32) -> (i32, i32) {
    %c0_i32 = arith.constant 0 : i32
    %c0_i32_0 = arith.constant 0 : i32
    %c0_i32_1 = arith.constant 0 : i32
    return %c0_i32, %c0_i32_0 : i32, i32
  }
  func.func @transform_4(%arg0: i32) -> (i32, i32) {
    %c0_i32 = arith.constant 0 : i32
    %c0_i32_0 = arith.constant 0 : i32
    return %arg0, %c0_i32 : i32, i32
  }
}

</mosaic_0001>

<bundles_post_ra>
// kernel: tpu_custom_call.1
= control target key start
LH: loop header
LB: loop body
LE: loop exit
PB: predicated region body
PF: predicated region fallthrough
CT: control target
= control target key end

     0   :  { %9 = vsyncpa [#allocation3], 0  ;;  %s2698_s0 = inlined_call_operand.hbm [shape: f32[16,8,32], index: 0, kind: input, shape index: {}]   ;;  %s2699_s1 = inlined_call_operand.hbm [shape: f32[32,32], index: 1, kind: input, shape index: {}]   ;;  %s2700_s2 = inlined_call_operand.vmem [shape: f32[1,32], index: 2, kind: input, shape index: {}]   ;;  %s2701_s3 = inlined_call_operand.vmem [shape: f32[1,32], index: 3, kind: input, shape index: {}]   ;;  %s2702_s4 = inlined_call_operand.hbm [shape: f32[16,32], index: 4, kind: output, shape index: {}]  }
   0x1   :  { %10 = vsyncpa [#allocation6], 0 }
   0x2   :  { %11 = vsyncpa [#allocation4], 0  ;;  %s16_s17 = sshll.u32 %s2698_s0, 4  ;;  %s1731_s18 = smov [#allocation2]   ;;  %s17_s17 = int_to_ptr.hbm [resolvable:$true] %s16_s17 }
   0x3   :  { %s18_s19 = sshll.u32 %s1731_s18, 4  ;;  %s29_s22 = sshll.u32 %s2699_s1, 4  ;;  %s19_s19 = int_to_ptr.vmem [resolvable:$true] %s18_s19  ;;  %s30_s22 = int_to_ptr.hbm [resolvable:$true] %s29_s22 }
   0x4   :  { %s1732_s23 = smov 128   ;;  %s1733_s24 = smov 8  }
   0x5   :  { %24 = dma.hbm_to_vmem [thread:$0]  %s17_s17, 2048, %s19_s19, [#allocation3], %s1732_s23, %s1732_s23, %s1733_s24  }
   0x6   :  { %s1734_s25 = smov [#allocation5]  }
   0x7   :  { %s31_s26 = sshll.u32 %s1734_s25, 4  ;;  %s32_s26 = int_to_ptr.vmem [resolvable:$true] %s31_s26 }
   0x8   :  { %37 = dma.hbm_to_vmem [thread:$0]  %s30_s22, 512, %s32_s26, [#allocation6], %s1732_s23, %s1732_s23, %s1733_s24  }
   0x9   :  { %1725 = dma.done.wait [#allocation3], 2048  }
   0xa   :  { %1726 = vsyncadd [#allocation3], 4294965248 }
   0xb   :  { %1727 = dma.done.wait [#allocation6], 512  }
   0xc   :  { %1728 = vsyncadd [#allocation6], 4294966784  ;;  %vm74_vm0 = vcmask 261120   ;;  %v69_v0 = vld [vmem:[#allocation5 + $0x18] sm:$0xff]  ;;  %v68_v1 = vld [vmem:[#allocation5 + $0x10] sm:$0xff]  ;;  %s1512_s5 = sshll.u32 %s2702_s4, 4  ;;  %s1513_s5 = int_to_ptr.hbm [resolvable:$true] %s1512_s5 }
   0xd   :  { %v67_v2 = vld [vmem:[#allocation5 + $0x8] sm:$0xff]  ;;  %v1773_v3 = vand.u32 4294901760, %v69_v0  ;;  %v1775_v4 = vand.u32 4294901760, %v68_v1  ;;  %v66_v6 = vld [vmem:[#allocation5] sm:$0xff]  ;;  %v60_v13 = vld [vmem:[#allocation2 + $0x50] sm:$0xff] }
   0xe   :  { %v1777_v5 = vand.u32 4294901760, %v67_v2  ;;  %v58_v7 = vld [vmem:[#allocation2 + $0x40] sm:$0xff]  ;;  %v59_v8 = vld [vmem:[#allocation2 + $0x48] sm:$0xff]  ;;  %v1779_v9 = vand.u32 4294901760, %v66_v6  ;;  %v106_v21 = vsel %vm74_vm0, %v60_v13, 0  ;;  %v52_v37 = vld [vmem:[#allocation2 + $0x10] sm:$0xff] }
   0xf   :  { %v100_v10 = vsel %vm74_vm0, %v58_v7, 0  ;;  %v103_v11 = vsel %vm74_vm0, %v59_v8, 0  ;;  %v50_v12 = vld [vmem:[#allocation2] sm:$0xff]  ;;  %1526 = vmatpush.msra.mxu2 %v1773_v3  ;;  %v285_v14 = vsub.f32 %v69_v0, %v1773_v3  ;;  %v291_v16 = vsub.f32 %v68_v1, %v1775_v4  ;;  %136 = vmatpush.msra.mxu0 %v1773_v3  ;;  %v51_v36 = vld [vmem:[#allocation2 + $0x8] sm:$0xff]  ;;  %v61_v46 = vld [vmem:[#allocation2 + $0x58] sm:$0xff] }
  0x10   :  { %v1785_v15 = vand.u32 4294901760, %v100_v10  ;;  %v297_v17 = vsub.f32 %v67_v2, %v1777_v5  ;;  %v1791_v18 = vsub.f32 %v66_v6, %v1779_v9  ;;  %v1793_v19 = vand.u32 4294901760, %v103_v11  ;;  %v53_v57 = vld [vmem:[#allocation2 + $0x18] sm:$0xff]  ;;  %v62_v1 = vld [vmem:[#allocation2 + $0x60] sm:$0xff] }
  0x11   :  { %v76_v20 = vsel %vm74_vm0, %v50_v12, 0  ;;  %1527 = vmatpush.msra.mxu2 %v1775_v4  ;;  %v286_v22 = vand.u32 4294901760, %v285_v14  ;;  %v292_v24 = vand.u32 4294901760, %v291_v16  ;;  %138 = vmatpush.msra.mxu0 %v1775_v4  ;;  %v1817_v35 = vand.u32 4294901760, %v106_v21 }
  0x12   :  { %v1799_v23 = vsub.f32 %v100_v10, %v1785_v15  ;;  %v298_v25 = vand.u32 4294901760, %v297_v17  ;;  %v304_v26 = vand.u32 4294901760, %v1791_v18  ;;  %v1804_v27 = vsub.f32 %v103_v11, %v1793_v19  ;;  %v54_v11 = vld [vmem:[#allocation2 + $0x20] sm:$0xff] }
  0x13   :  { %v1806_v28 = vand.u32 4294901760, %v76_v20  ;;  %1528 = vmatpush.msra.mxu2 %v1777_v5  ;;  %v287_v29 = vsub.f32 %v285_v14, %v286_v22  ;;  %v293_v31 = vsub.f32 %v291_v16, %v292_v24  ;;  %140 = vmatpush.msra.mxu0 %v1777_v5  ;;  %v79_v45 = vsel %vm74_vm0, %v51_v36, 0 }
  0x14   :  { %v209_v30 = vand.u32 4294901760, %v1799_v23  ;;  %v299_v32 = vsub.f32 %v297_v17, %v298_v25  ;;  %v305_v33 = vsub.f32 %v1791_v18, %v304_v26  ;;  %v217_v41 = vand.u32 4294901760, %v1804_v27 }
  0x15   :  { %v1815_v34 = vsub.f32 %v76_v20, %v1806_v28  ;;  %1529 = vmatpush.msra.mxu2 %v1779_v9  ;;  %v288_v38 = vand.u32 4294901760, %v287_v29  ;;  %v294_v40 = vand.u32 4294901760, %v293_v31  ;;  %142 = vmatpush.msra.mxu0 %v1779_v9  ;;  %v82_v47 = vsel %vm74_vm0, %v52_v37, 0  ;;  %v64_v37 = vld [vmem:[#allocation2 + $0x70] sm:$0xff] }
  0x16   :  { %v210_v39 = vsub.f32 %v1799_v23, %v209_v30  ;;  %v300_v44 = vand.u32 4294901760, %v299_v32  ;;  %v1831_v49 = vand.u32 4294901760, %v79_v45  ;;  %v306_v50 = vand.u32 4294901760, %v305_v33 }
  0x17   :  { %387 = vmatpush.msrb.mxu2 %v285_v14  ;;  %v145_v42 = vand.u32 4294901760, %v1815_v34  ;;  %610 = vmatpush.msrb.mxu0 %v286_v22  ;;  %v218_v51 = vsub.f32 %v1804_v27, %v217_v41  ;;  %v1837_v52 = vsub.f32 %v106_v21, %v1817_v35  ;;  %v1839_v53 = vand.u32 4294901760, %v82_v47 }
  0x18   :  { %1530 = vmatpush.msra.mxu3 %v288_v38  ;;  %v211_v43 = vand.u32 4294901760, %v210_v39  ;;  %289 = vmatpush.msra.mxu1 %v288_v38  ;;  %v1842_v55 = vsub.f32 %v79_v45, %v1831_v49  ;;  %v109_v56 = vsel %vm74_vm0, %v61_v46, 0  ;;  %v85_v63 = vsel %vm74_vm0, %v53_v57, 0  ;;  %v56_v46 = vld [vmem:[#allocation2 + $0x30] sm:$0xff]  ;;  %v65_v57 = vld [vmem:[#allocation2 + $0x78] sm:$0xff] }
  0x19   :  { %v146_v48 = vsub.f32 %v1815_v34, %v145_v42  ;;  %390 = vmatpush.msrb.mxu2 %v291_v16  ;;  %614 = vmatpush.msrb.mxu0 %v292_v24  ;;  %v1847_v59 = vsub.f32 %v82_v47, %v1839_v53  ;;  %v219_v60 = vand.u32 4294901760, %v218_v51  ;;  %v225_v61 = vand.u32 4294901760, %v1837_v52 }
  0x1a   :  { %212 = vmatmul.f32.vlgmr.msra.gmra.mxu2 %v211_v43  ;;  %1531 = vmatpush.msra.mxu3 %v294_v40  ;;  %v153_v58 = vand.u32 4294901760, %v1842_v55  ;;  %v1850_v62 = vand.u32 4294901760, %v109_v56  ;;  %v1862_v7 = vand.u32 4294901760, %v85_v63  ;;  %v118_v45 = vsel %vm74_vm0, %v64_v37, 0 }
  0x1b   :  { %295 = vmatpush.msra.mxu1 %v294_v40  ;;  %v147_v54 = vand.u32 4294901760, %v146_v48  ;;  %393 = vmatpush.msrb.mxu2 %v297_v17  ;;  %v161_v6 = vand.u32 4294901760, %v1847_v59  ;;  %v226_v8 = vsub.f32 %v1837_v52, %v225_v61 }
  0x1c   :  { %1532 = vmatpush.msra.mxu3 %v300_v44  ;;  %618 = vmatpush.msrb.mxu0 %v298_v25  ;;  %v154_v0 = vsub.f32 %v1842_v55, %v153_v58  ;;  %v1871_v10 = vsub.f32 %v109_v56, %v1850_v62  ;;  %v1880_v13 = vsub.f32 %v85_v63, %v1862_v7  ;;  %v94_v56 = vsel %vm74_vm0, %v56_v46, 0 }
  0x1d   :  { %301 = vmatpush.msra.mxu1 %v300_v44  ;;  %148 = vmatmul.f32.vlgmr.msra.gmra.mxu0 %v147_v54  ;;  %v162_v12 = vsub.f32 %v1847_v59, %v161_v6  ;;  %v227_v14 = vand.u32 4294901760, %v226_v8  ;;  %v1930_v54 = vand.u32 4294901760, %v118_v45  ;;  %v121_v8 = vsel %vm74_vm0, %v65_v57, 0 }
  0x1e   :  { %1533 = vmatpush.msra.mxu3 %v306_v50  ;;  %396 = vmatpush.msrb.mxu2 %v1791_v18  ;;  %v155_v2 = vand.u32 4294901760, %v154_v0  ;;  %v233_v16 = vand.u32 4294901760, %v1871_v10  ;;  %v63_v18 = vld [vmem:[#allocation2 + $0x68] sm:$0xff]  ;;  %v169_v21 = vand.u32 4294901760, %v1880_v13  ;;  %v1936_v0 = vand.u32 4294901760, %v94_v56 }
  0x1f   :  { %341 = vmatmul.f32.vlgmr.msra.gmra.mxu3 %v1785_v15  ;;  %307 = vmatpush.msra.mxu1 %v306_v50  ;;  %v163_v20 = vand.u32 4294901760, %v162_v12  ;;  %v115_v25 = vsel %vm74_vm0, %v63_v18, 0  ;;  %v1950_v18 = vand.u32 4294901760, %v121_v8 }
  0x20   :  { %491 = vmatpush.msrb.mxu3 %v1773_v3  ;;  %309 = vmatmul.f32.vlgmr.msra.gmra.mxu1 %v1806_v28  ;;  %v234_v22 = vsub.f32 %v1871_v10, %v233_v16  ;;  %v1908_v33 = vand.u32 4294901760, %v115_v25  ;;  %v192_v12 = vsub.f32 %v94_v56, %v1936_v0 }
  0x21   :  { %701 = vmatpush.msrb.mxu1 %v1773_v3  ;;  %622 = vmatpush.msrb.mxu0 %v304_v26  ;;  %v112_v3 = vsel %vm74_vm0, %v62_v1, 0  ;;  %v55_v26 = vld [vmem:[#allocation2 + $0x28] sm:$0xff] }
  0x22   :  { %220 = vmatmul.f32.gmra.mxu2 %v219_v60  ;;  %493 = vmatpush.msrb.mxu3 %v1775_v4  ;;  %v1884_v17 = vand.u32 4294901760, %v112_v3  ;;  %v235_v31 = vand.u32 4294901760, %v234_v22  ;;  %v91_v36 = vsel %vm74_vm0, %v55_v26, 0  ;;  %v1920_v44 = vsub.f32 %v115_v25, %v1908_v33 }
  0x23   :  { %703 = vmatpush.msrb.mxu1 %v1775_v4  ;;  %v88_v4 = vsel %vm74_vm0, %v54_v11, 0  ;;  %v1914_v40 = vand.u32 4294901760, %v91_v36  ;;  %v193_v25 = vand.u32 4294901760, %v192_v12 }
  0x24   :  { %495 = vmatpush.msrb.mxu3 %v1777_v5  ;;  %v1898_v24 = vsub.f32 %v112_v3, %v1884_v17  ;;  %v249_v51 = vand.u32 4294901760, %v1920_v44  ;;  %v57_v3 = vld [vmem:[#allocation2 + $0x38] sm:$0xff] }
  0x25   :  { %156 = vmatmul.f32.gmra.mxu0 %v155_v2  ;;  %705 = vmatpush.msrb.mxu1 %v1777_v5  ;;  %v1892_v5 = vand.u32 4294901760, %v88_v4  ;;  %v1927_v48 = vsub.f32 %v91_v36, %v1914_v40  ;;  %v1942_v2 = vsub.f32 %v118_v45, %v1930_v54  ;;  %v194_v36 = vsub.f32 %v192_v12, %v193_v25 }
  0x26   :  { %497 = vmatpush.msrb.mxu3 %v1779_v9  ;;  %v241_v32 = vand.u32 4294901760, %v1898_v24  ;;  %v250_v1 = vsub.f32 %v1920_v44, %v249_v51 }
  0x27   :  { %345 = vmatmul.f32.gmra.mxu3 %v1793_v19  ;;  %707 = vmatpush.msrb.mxu1 %v1779_v9  ;;  %v170_v9 = vsub.f32 %v1880_v13, %v169_v21  ;;  %v1905_v29 = vsub.f32 %v88_v4, %v1892_v5  ;;  %v185_v63 = vand.u32 4294901760, %v1927_v48  ;;  %v257_v4 = vand.u32 4294901760, %v1942_v2 }
  0x28   :  { %313 = vmatmul.f32.gmra.mxu1 %v1831_v49  ;;  %v242_v43 = vsub.f32 %v1898_v24, %v241_v32  ;;  %v195_v45 = vand.u32 4294901760, %v194_v36 }
  0x29   :  { %v171_v38 = vand.u32 4294901760, %v170_v9  ;;  %v177_v39 = vand.u32 4294901760, %v1905_v29  ;;  %v186_v11 = vsub.f32 %v1927_v48, %v185_v63  ;;  %v258_v9 = vsub.f32 %v1942_v2, %v257_v4 }
  0x2a   :  { %228 = vmatmul.f32.gmra.mxu2 %v227_v14  ;;  %v243_v50 = vand.u32 4294901760, %v242_v43  ;;  %v251_v14 = vand.u32 4294901760, %v250_v1 }
  0x2b   :  { %v178_v47 = vsub.f32 %v1905_v29, %v177_v39  ;;  %v187_v22 = vand.u32 4294901760, %v186_v11 }
  0x2d   :  { %164 = vmatmul.f32.gmra.mxu0 %v163_v20  ;;  %v179_v60 = vand.u32 4294901760, %v178_v47  ;;  %v97_v20 = vsel %vm74_vm0, %v57_v3, 0 }
  0x2e   :  { %v199_v26 = vand.u32 4294901760, %v97_v20 }
  0x2f   :  { %349 = vmatmul.f32.gmra.mxu3 %v1817_v35 }
  0x30   :  { %317 = vmatmul.f32.gmra.mxu1 %v1839_v53  ;;  %v200_v37 = vsub.f32 %v97_v20, %v199_v26 }
  0x32   :  { %236 = vmatmul.f32.gmra.mxu2 %v235_v31  ;;  %v1959_v31 = vsub.f32 %v121_v8, %v1950_v18  ;;  %v201_v46 = vand.u32 4294901760, %v200_v37 }
  0x34   :  { %v265_v43 = vand.u32 4294901760, %v1959_v31 }
  0x35   :  { %172 = vmatmul.f32.gmra.mxu0 %v171_v38  ;;  %v259_v38 = vand.u32 4294901760, %v258_v9 }
  0x36   :  { %v266_v47 = vsub.f32 %v1959_v31, %v265_v43 }
  0x37   :  { %353 = vmatmul.f32.gmra.mxu3 %v1850_v62 }
  0x38   :  { %321 = vmatmul.f32.gmra.mxu1 %v1862_v7  ;;  %v267_v56 = vand.u32 4294901760, %v266_v47 }
  0x3a   :  { %244 = vmatmul.f32.gmra.mxu2 %v243_v50  ;;  %v202_v50 = vsub.f32 %v200_v37, %v201_v46 }
  0x3c   :  { %v203_v57 = vand.u32 4294901760, %v202_v50 }
  0x3d   :  { %180 = vmatmul.f32.gmra.mxu0 %v179_v60 }
  0x3f   :  { %357 = vmatmul.f32.gmra.mxu3 %v1884_v17 }
  0x40   :  { %325 = vmatmul.f32.gmra.mxu1 %v1892_v5 }
  0x42   :  { %252 = vmatmul.f32.gmra.mxu2 %v251_v14 }
  0x45   :  { %188 = vmatmul.f32.gmra.mxu0 %v187_v22 }
  0x47   :  { %361 = vmatmul.f32.gmra.mxu3 %v1908_v33 }
  0x48   :  { %329 = vmatmul.f32.gmra.mxu1 %v1914_v40 }
  0x4a   :  { %260 = vmatmul.f32.gmra.mxu2 %v259_v38 }
  0x4d   :  { %196 = vmatmul.f32.gmra.mxu0 %v195_v45 }
  0x4f   :  { %365 = vmatmul.f32.gmra.mxu3 %v1930_v54 }
  0x50   :  { %333 = vmatmul.f32.gmra.mxu1 %v1936_v0 }
  0x52   :  { %268 = vmatmul.f32.gmra.mxu2 %v267_v56 }
  0x55   :  { %204 = vmatmul.f32.gmra.mxu0 %v203_v57 }
  0x57   :  { %369 = vmatmul.f32.gmra.mxu3 %v1950_v18 }
  0x58   :  { %337 = vmatmul.f32.gmra.mxu1 %v199_v26 }
  0x5a   :  { %399 = vmatmul.f32.vlgmr.msrb.gmra.mxu2 %v1815_v34 }
  0x5d   :  { %624 = vmatmul.f32.vlgmr.msrb.gmra.mxu0 %v1806_v28 }
  0x5f   :  { %501 = vmatmul.f32.vlgmr.msrb.gmra.mxu3 %v145_v42 }
  0x60   :  { %709 = vmatmul.f32.vlgmr.msrb.gmra.mxu1 %v1806_v28  ;;  %v2006_v28 = vld [vmem:[%s2700_s2] ss:$0 sm:$0xff] }
  0x62   :  { %404 = vmatmul.f32.gmra.mxu2 %v1842_v55 }
  0x65   :  { %628 = vmatmul.f32.gmra.mxu0 %v1831_v49 }
  0x67   :  { %507 = vmatmul.f32.gmra.mxu3 %v153_v58 }
  0x68   :  { %713 = vmatmul.f32.gmra.mxu1 %v1831_v49 }
  0x6a   :  { %409 = vmatmul.f32.gmra.mxu2 %v1847_v59 }
  0x6d   :  { %632 = vmatmul.f32.gmra.mxu0 %v1839_v53 }
  0x6f   :  { %513 = vmatmul.f32.gmra.mxu3 %v161_v6 }
  0x70   :  { %717 = vmatmul.f32.gmra.mxu1 %v1839_v53 }
  0x72   :  { %414 = vmatmul.f32.gmra.mxu2 %v1880_v13 }
  0x75   :  { %636 = vmatmul.f32.gmra.mxu0 %v1862_v7 }
  0x77   :  { %519 = vmatmul.f32.gmra.mxu3 %v169_v21 }
  0x78   :  { %721 = vmatmul.f32.gmra.mxu1 %v1862_v7 }
  0x7a   :  { %419 = vmatmul.f32.gmra.mxu2 %v1905_v29 }
  0x7d   :  { %640 = vmatmul.f32.gmra.mxu0 %v1892_v5 }
  0x7f   :  { %525 = vmatmul.f32.gmra.mxu3 %v177_v39 }
  0x80   :  { %725 = vmatmul.f32.gmra.mxu1 %v1892_v5 }
  0x82   :  { %424 = vmatmul.f32.gmra.mxu2 %v1927_v48 }
  0x85   :  { %644 = vmatmul.f32.gmra.mxu0 %v1914_v40 }
  0x87   :  { %531 = vmatmul.f32.gmra.mxu3 %v185_v63 }
  0x88   :  { %729 = vmatmul.f32.gmra.mxu1 %v1914_v40 }
  0x8a   :  { %429 = vmatmul.f32.gmra.mxu2 %v192_v12 }
  0x8d   :  { %648 = vmatmul.f32.gmra.mxu0 %v1936_v0 }
  0x8f   :  { %537 = vmatmul.f32.gmra.mxu3 %v193_v25 }
  0x90   :  { %733 = vmatmul.f32.gmra.mxu1 %v1936_v0 }
  0x92   :  { %434 = vmatmul.f32.gmra.mxu2 %v200_v37 }
  0x95   :  { %652 = vmatmul.f32.gmra.mxu0 %v199_v26 }
  0x97   :  { %543 = vmatmul.f32.gmra.mxu3 %v201_v46 }
  0x98   :  { %737 = vmatmul.f32.gmra.mxu1 %v199_v26 }
  0x9a   :  { %439 = vmatmul.f32.gmra.mxu2 %v1799_v23  ;;  %v2008_v34 = vpop.f32.mrf.mxu0 }
  0x9d   :  { %v213_v42 = vpop.f32.mrf.mxu2  ;;  %v2010_v49 = vpop.f32.mrf.mxu1  ;;  %656 = vmatmul.f32.gmra.mxu0 %v1785_v15 }
  0x9e   :  { %v214_v53 = vadd.f32 %v2006_v28, %v213_v42 }
  0x9f   :  { %549 = vmatmul.f32.gmra.mxu3 %v209_v30 }
  0xa0   :  { %741 = vmatmul.f32.gmra.mxu1 %v1785_v15 }
  0xa2   :  { %444 = vmatmul.f32.gmra.mxu2 %v1804_v27  ;;  %v342_v55 = vpop.f32.mrf.mxu3  ;;  %v2018_v58 = vpop.f32.mrf.mxu0 }
  0xa3   :  { %v2020_v59 = vadd.f32 %v342_v55, %v214_v53 }
  0xa5   :  { %v221_v6 = vpop.f32.mrf.mxu2  ;;  %v2022_v7 = vpop.f32.mrf.mxu1  ;;  %660 = vmatmul.f32.gmra.mxu0 %v1793_v19 }
  0xa6   :  { %v222_v13 = vadd.f32 %v2006_v28, %v221_v6 }
  0xa7   :  { %555 = vmatmul.f32.gmra.mxu3 %v217_v41 }
  0xa8   :  { %745 = vmatmul.f32.gmra.mxu1 %v1793_v19 }
  0xaa   :  { %449 = vmatmul.f32.gmra.mxu2 %v1837_v52  ;;  %v346_v15 = vpop.f32.mrf.mxu3  ;;  %v2030_v23 = vpop.f32.mrf.mxu0 }
  0xab   :  { %v2032_v30 = vadd.f32 %v346_v15, %v222_v13  ;;  %v2113_v15 = vld [vmem:[%s2701_s3] ss:$0 sm:$0xff]  ;;  %s1735_s3 = smov [#allocation7]  }
  0xac   :  { %s1510_s28 = sshll.u32 %s1735_s3, 4  ;;  %s1511_s28 = int_to_ptr.vmem [resolvable:$true] %s1510_s28 }
  0xad   :  { %v229_v21 = vpop.f32.mrf.mxu2  ;;  %v2034_v5 = vpop.f32.mrf.mxu1  ;;  %664 = vmatmul.f32.gmra.mxu0 %v1817_v35 }
  0xae   :  { %v230_v29 = vadd.f32 %v2006_v28, %v229_v21 }
  0xaf   :  { %561 = vmatmul.f32.gmra.mxu3 %v225_v61 }
  0xb0   :  { %749 = vmatmul.f32.gmra.mxu1 %v1817_v35 }
  0xb2   :  { %454 = vmatmul.f32.gmra.mxu2 %v1871_v10  ;;  %v350_v19 = vpop.f32.mrf.mxu3  ;;  %v2042_v27 = vpop.f32.mrf.mxu0 }
  0xb3   :  { %v2044_v41 = vadd.f32 %v350_v19, %v230_v29 }
  0xb5   :  { %v237_v39 = vpop.f32.mrf.mxu2  ;;  %v2046_v40 = vpop.f32.mrf.mxu1  ;;  %668 = vmatmul.f32.gmra.mxu0 %v1850_v62 }
  0xb6   :  { %v238_v48 = vadd.f32 %v2006_v28, %v237_v39 }
  0xb7   :  { %567 = vmatmul.f32.gmra.mxu3 %v233_v16 }
  0xb8   :  { %753 = vmatmul.f32.gmra.mxu1 %v1850_v62 }
  0xba   :  { %459 = vmatmul.f32.gmra.mxu2 %v1898_v24  ;;  %v354_v35 = vpop.f32.mrf.mxu3  ;;  %v2054_v52 = vpop.f32.mrf.mxu0 }
  0xbb   :  { %v2056_v61 = vadd.f32 %v354_v35, %v238_v48 }
  0xbd   :  { %v245_v60 = vpop.f32.mrf.mxu2  ;;  %v2058_v63 = vpop.f32.mrf.mxu1  ;;  %672 = vmatmul.f32.gmra.mxu0 %v1884_v17 }
  0xbe   :  { %v246_v0 = vadd.f32 %v2006_v28, %v245_v60 }
  0xbf   :  { %573 = vmatmul.f32.gmra.mxu3 %v241_v32 }
  0xc0   :  { %757 = vmatmul.f32.gmra.mxu1 %v1884_v17 }
  0xc2   :  { %464 = vmatmul.f32.gmra.mxu2 %v1920_v44  ;;  %v358_v62 = vpop.f32.mrf.mxu3  ;;  %v2066_v10 = vpop.f32.mrf.mxu0 }
  0xc3   :  { %v2068_v16 = vadd.f32 %v358_v62, %v246_v0  ;;  %v174_v62 = vadd.f32 %v2006_v28, %v2042_v27  ;;  %v182_v27 = vadd.f32 %v2006_v28, %v2054_v52  ;;  %v190_v52 = vadd.f32 %v2006_v28, %v2066_v10 }
  0xc5   :  { %v253_v1 = vpop.f32.mrf.mxu2  ;;  %v2070_v8 = vpop.f32.mrf.mxu1  ;;  %676 = vmatmul.f32.gmra.mxu0 %v1908_v33 }
  0xc6   :  { %v254_v3 = vadd.f32 %v2006_v28, %v253_v1 }
  0xc7   :  { %579 = vmatmul.f32.gmra.mxu3 %v249_v51 }
  0xc8   :  { %761 = vmatmul.f32.gmra.mxu1 %v1908_v33 }
  0xca   :  { %469 = vmatmul.f32.gmra.mxu2 %v1942_v2  ;;  %v362_v17 = vpop.f32.mrf.mxu3  ;;  %v2078_v24 = vpop.f32.mrf.mxu0 }
  0xcb   :  { %v2080_v32 = vadd.f32 %v362_v17, %v254_v3  ;;  %v198_v10 = vadd.f32 %v2006_v28, %v2078_v24 }
  0xcd   :  { %v261_v11 = vpop.f32.mrf.mxu2  ;;  %v2082_v12 = vpop.f32.mrf.mxu1  ;;  %680 = vmatmul.f32.gmra.mxu0 %v1930_v54 }
  0xce   :  { %v262_v14 = vadd.f32 %v2006_v28, %v261_v11 }
  0xcf   :  { %585 = vmatmul.f32.gmra.mxu3 %v257_v4  ;;  %v150_v4 = vadd.f32 %v2006_v28, %v2008_v34 }
  0xd0   :  { %765 = vmatmul.f32.gmra.mxu1 %v1930_v54 }
  0xd1   :  { %v311_v45 = vadd.f32 %v2010_v49, %v150_v4  ;;  %v166_v49 = vadd.f32 %v2006_v28, %v2030_v23 }
  0xd2   :  { %474 = vmatmul.f32.gmra.mxu2 %v1959_v31  ;;  %v366_v33 = vpop.f32.mrf.mxu3  ;;  %v205_v44 = vpop.f32.mrf.mxu0  ;;  %v158_v31 = vadd.f32 %v2006_v28, %v2018_v58 }
  0xd3   :  { %v2090_v51 = vadd.f32 %v366_v33, %v262_v14  ;;  %v206_v20 = vadd.f32 %v2006_v28, %v205_v44 }
  0xd4   :  { %v315_v42 = vadd.f32 %v2022_v7, %v158_v31  ;;  %v319_v7 = vadd.f32 %v2034_v5, %v166_v49  ;;  %v323_v5 = vadd.f32 %v2046_v40, %v174_v62  ;;  %v327_v40 = vadd.f32 %v2058_v63, %v182_v27 }
  0xd5   :  { %v269_v22 = vpop.f32.mrf.mxu2  ;;  %v338_v25 = vpop.f32.mrf.mxu1  ;;  %684 = vmatmul.f32.gmra.mxu0 %v1950_v18  ;;  %v331_v63 = vadd.f32 %v2070_v8, %v190_v52  ;;  %v335_v8 = vadd.f32 %v2082_v12, %v198_v10 }
  0xd6   :  { %v270_v26 = vadd.f32 %v2006_v28, %v269_v22  ;;  %v2095_v9 = vadd.f32 %v338_v25, %v206_v20 }
  0xd7   :  { %591 = vmatmul.f32.gmra.mxu3 %v265_v43 }
  0xd8   :  { %769 = vmatmul.f32.gmra.mxu1 %v1950_v18 }
  0xda   :  { %v370_v54 = vpop.f32.mrf.mxu3  ;;  %v625_v2 = vpop.f32.mrf.mxu0 }
  0xdb   :  { %v2102_v36 = vadd.f32 %v370_v54, %v270_v26 }
  0xdd   :  { %v400_v37 = vpop.f32.mrf.mxu2  ;;  %v710_v38 = vpop.f32.mrf.mxu1 }
  0xde   :  { %v401_v46 = vadd.f32 %v400_v37, %v311_v45 }
  0xe2   :  { %v502_v47 = vpop.f32.mrf.mxu3  ;;  %v629_v50 = vpop.f32.mrf.mxu0 }
  0xe3   :  { %v503_v43 = vadd.f32 %v502_v47, %v401_v46 }
  0xe5   :  { %v405_v56 = vpop.f32.mrf.mxu2  ;;  %v626_v18 = vadd.f32 %v625_v2, %v503_v43  ;;  %v714_v57 = vpop.f32.mrf.mxu1 }
  0xe6   :  { %v406_v34 = vadd.f32 %v405_v56, %v315_v42 }
  0xe7   :  { %v711_v53 = vadd.f32 %v710_v38, %v626_v18 }
  0xe9   :  { %1541 = vtanh.f32 %v711_v53 }
  0xea   :  { %v508_v55 = vpop.f32.mrf.mxu3  ;;  %v633_v6 = vpop.f32.mrf.mxu0 }
  0xeb   :  { %v509_v13 = vadd.f32 %v508_v55, %v406_v34 }
  0xed   :  { %v410_v58 = vpop.f32.mrf.mxu2  ;;  %v630_v21 = vadd.f32 %v629_v50, %v509_v13  ;;  %v718_v29 = vpop.f32.mrf.mxu1 }
  0xee   :  { %v411_v35 = vadd.f32 %v410_v58, %v319_v7 }
  0xef   :  { %v1542_v19 = vpop.eup %1541  ;;  %v715_v39 = vadd.f32 %v714_v57, %v630_v21 }
  0xf0   :  { %v793_v48 = vmul.f32 %v1542_v19, %v2113_v15 }
  0xf1   :  { %1543 = vtanh.f32 %v715_v39 }
  0xf2   :  { %v514_v60 = vpop.f32.mrf.mxu3  ;;  %v809_v23 = vsel %vm74_vm0, %v793_v48, 0.0  ;;  %v637_v0 = vpop.f32.mrf.mxu0 }
  0xf3   :  { %v515_v1 = vadd.f32 %v514_v60, %v411_v35  ;;  %810 = vadd.xlane.f32.xlu0 %v809_v23 }
  0xf5   :  { %v415_v3 = vpop.f32.mrf.mxu2  ;;  %v634_v17 = vadd.f32 %v633_v6, %v515_v1  ;;  %v722_v11 = vpop.f32.mrf.mxu1 }
  0xf6   :  { %v416_v20 = vadd.f32 %v415_v3, %v323_v5 }
  0xf7   :  { %v1544_v14 = vpop.eup %1543  ;;  %v719_v33 = vadd.f32 %v718_v29, %v634_v17 }
  0xf8   :  { %v794_v44 = vmul.f32 %v1544_v14, %v2113_v15 }
  0xf9   :  { %1545 = vtanh.f32 %v719_v33 }
  0xfa   :  { %v520_v22 = vpop.f32.mrf.mxu3  ;;  %v812_v25 = vsel %vm74_vm0, %v794_v44, 0.0  ;;  %v641_v26 = vpop.f32.mrf.mxu0 }
  0xfb   :  { %v521_v54 = vadd.f32 %v520_v22, %v416_v20  ;;  %813 = vadd.xlane.f32.xlu0 %v812_v25 }
  0xfd   :  { %v420_v2 = vpop.f32.mrf.mxu2  ;;  %v638_v4 = vadd.f32 %v637_v0, %v521_v54  ;;  %v726_v37 = vpop.f32.mrf.mxu1 }
  0xfe   :  { %v421_v47 = vadd.f32 %v420_v2, %v327_v40 }
  0xff   :  { %v1546_v38 = vpop.eup %1545  ;;  %v723_v45 = vadd.f32 %v722_v11, %v638_v4 }
 0x100   :  { %v795_v46 = vmul.f32 %v1546_v38, %v2113_v15 }
 0x101   :  { %1547 = vtanh.f32 %v723_v45 }
 0x102   :  { %v526_v50 = vpop.f32.mrf.mxu3  ;;  %v815_v31 = vsel %vm74_vm0, %v795_v46, 0.0  ;;  %v645_v43 = vpop.f32.mrf.mxu0 }
 0x103   :  { %v527_v56 = vadd.f32 %v526_v50, %v421_v47  ;;  %816 = vadd.xlane.f32.xlu2 %v815_v31 }
 0x105   :  { %v425_v18 = vpop.f32.mrf.mxu2  ;;  %v642_v57 = vadd.f32 %v641_v26, %v527_v56  ;;  %v730_v42 = vpop.f32.mrf.mxu1 }
 0x106   :  { %v426_v6 = vadd.f32 %v425_v18, %v331_v63 }
 0x107   :  { %v1548_v53 = vpop.eup %1547  ;;  %v727_v34 = vadd.f32 %v726_v37, %v642_v57 }
 0x108   :  { %v796_v55 = vmul.f32 %v1548_v53, %v2113_v15 }
 0x109   :  { %1549 = vtanh.f32 %v727_v34 }
 0x10a   :  { %v532_v49 = vpop.f32.mrf.mxu3  ;;  %v818_v13 = vsel %vm74_vm0, %v796_v55, 0.0  ;;  %v649_v58 = vpop.f32.mrf.mxu0 }
 0x10b   :  { %v533_v21 = vadd.f32 %v532_v49, %v426_v6  ;;  %819 = vadd.xlane.f32.xlu0 %v818_v13 }
 0x10d   :  { %v430_v29 = vpop.f32.mrf.mxu2  ;;  %v646_v19 = vadd.f32 %v645_v43, %v533_v21  ;;  %v734_v7 = vpop.f32.mrf.mxu1 }
 0x10e   :  { %v431_v60 = vadd.f32 %v430_v29, %v335_v8 }
 0x10f   :  { %v1550_v39 = vpop.eup %1549  ;;  %v731_v48 = vadd.f32 %v730_v42, %v646_v19 }
 0x110   :  { %v797_v35 = vmul.f32 %v1550_v39, %v2113_v15 }
 0x111   :  { %1551 = vtanh.f32 %v731_v48 }
 0x112   :  { %v538_v23 = vpop.f32.mrf.mxu3  ;;  %v821_v0 = vsel %vm74_vm0, %v797_v35, 0.0  ;;  %v2138_v62 = vpop.f32.mrf.mxu0 }
 0x113   :  { %v539_v1 = vadd.f32 %v538_v23, %v431_v60  ;;  %822 = vadd.xlane.f32.xlu2 %v821_v0 }
 0x115   :  { %v2140_v28 = vpop.f32.mrf.mxu2  ;;  %v650_v24 = vadd.f32 %v649_v58, %v539_v1  ;;  %v2142_v3 = vpop.f32.mrf.mxu1 }
 0x117   :  { %v1552_v17 = vpop.eup %1551  ;;  %v735_v11 = vadd.f32 %v734_v7, %v650_v24 }
 0x118   :  { %v798_v12 = vmul.f32 %v1552_v17, %v2113_v15 }
 0x119   :  { %1553 = vtanh.f32 %v735_v11 }
 0x11a   :  { %v2145_v14 = vpop.f32.mrf.mxu3  ;;  %v824_v5 = vsel %vm74_vm0, %v798_v12, 0.0  ;;  %v657_v33 = vpop.f32.mrf.mxu0 }
 0x11b   :  { %825 = vadd.xlane.f32.xlu1 %v824_v5 }
 0x11d   :  { %v440_v44 = vpop.f32.mrf.mxu2  ;;  %v742_v20 = vpop.f32.mrf.mxu1 }
 0x11e   :  { %v441_v26 = vadd.f32 %v440_v44, %v2020_v59 }
 0x11f   :  { %v1554_v22 = vpop.eup %1553 }
 0x120   :  { %v799_v25 = vmul.f32 %v1554_v22, %v2113_v15 }
 0x122   :  { %v550_v27 = vpop.f32.mrf.mxu3  ;;  %v827_v54 = vsel %vm74_vm0, %v799_v25, 0.0  ;;  %v661_v2 = vpop.f32.mrf.mxu0 }
 0x123   :  { %v551_v4 = vadd.f32 %v550_v27, %v441_v26  ;;  %828 = vadd.xlane.f32.xlu0 %v827_v54 }
 0x125   :  { %v445_v37 = vpop.f32.mrf.mxu2  ;;  %v658_v38 = vadd.f32 %v657_v33, %v551_v4  ;;  %v746_v40 = vpop.f32.mrf.mxu1  ;;  %v436_v33 = vadd.f32 %v2140_v28, %v2095_v9 }
 0x126   :  { %v446_v46 = vadd.f32 %v445_v37, %v2032_v30 }
 0x127   :  { %v743_v45 = vadd.f32 %v742_v20, %v658_v38  ;;  %v545_v25 = vadd.f32 %v2145_v14, %v436_v33 }
 0x129   :  { %1555 = vtanh.f32 %v743_v45 }
 0x12a   :  { %v556_v47 = vpop.f32.mrf.mxu3  ;;  %v665_v50 = vpop.f32.mrf.mxu0 }
 0x12b   :  { %v557_v31 = vadd.f32 %v556_v47, %v446_v46 }
 0x12d   :  { %v450_v43 = vpop.f32.mrf.mxu2  ;;  %v662_v52 = vadd.f32 %v661_v2, %v557_v31  ;;  %v750_v56 = vpop.f32.mrf.mxu1  ;;  %v654_v2 = vadd.f32 %v2138_v62, %v545_v25 }
 0x12e   :  { %v451_v42 = vadd.f32 %v450_v43, %v2044_v41 }
 0x12f   :  { %v1556_v59 = vpop.eup %1555  ;;  %v747_v18 = vadd.f32 %v746_v40, %v662_v52  ;;  %v739_v45 = vadd.f32 %v2142_v3, %v654_v2 }
 0x130   :  { %v801_v57 = vmul.f32 %v1556_v59, %v2113_v15 }
 0x131   :  { %1557 = vtanh.f32 %v747_v18 }
 0x132   :  { %v562_v53 = vpop.f32.mrf.mxu3  ;;  %v833_v63 = vsel %vm74_vm0, %v801_v57, 0.0  ;;  %v669_v34 = vpop.f32.mrf.mxu0 }
 0x133   :  { %v563_v55 = vadd.f32 %v562_v53, %v451_v42  ;;  %834 = vadd.xlane.f32.xlu1 %v833_v63 }
 0x135   :  { %v455_v30 = vpop.f32.mrf.mxu2  ;;  %v666_v6 = vadd.f32 %v665_v50, %v563_v55  ;;  %v754_v49 = vpop.f32.mrf.mxu1 }
 0x136   :  { %v456_v21 = vadd.f32 %v455_v30, %v2056_v61 }
 0x137   :  { %v1558_v13 = vpop.eup %1557  ;;  %v751_v58 = vadd.f32 %v750_v56, %v666_v6 }
 0x138   :  { %v802_v10 = vmul.f32 %v1558_v13, %v2113_v15 }
 0x139   :  { %1559 = vtanh.f32 %v751_v58 }
 0x13a   :  { %v568_v29 = vpop.f32.mrf.mxu3  ;;  %v836_v41 = vsel %vm74_vm0, %v802_v10, 0.0  ;;  %v673_v7 = vpop.f32.mrf.mxu0 }
 0x13b   :  { %v569_v19 = vadd.f32 %v568_v29, %v456_v21  ;;  %837 = vadd.xlane.f32.xlu1 %v836_v41 }
 0x13d   :  { %v460_v39 = vpop.f32.mrf.mxu2  ;;  %v670_v8 = vadd.f32 %v669_v34, %v569_v19  ;;  %v758_v48 = vpop.f32.mrf.mxu1 }
 0x13e   :  { %v461_v0 = vadd.f32 %v460_v39, %v2068_v16 }
 0x13f   :  { %v1560_v35 = vpop.eup %1559  ;;  %v755_v60 = vadd.f32 %v754_v49, %v670_v8 }
 0x140   :  { %v803_v23 = vmul.f32 %v1560_v35, %v2113_v15 }
 0x141   :  { %1561 = vtanh.f32 %v755_v60 }
 0x142   :  { %v574_v1 = vpop.f32.mrf.mxu3  ;;  %v839_v61 = vsel %vm74_vm0, %v803_v23, 0.0  ;;  %v677_v12 = vpop.f32.mrf.mxu0 }
 0x143   :  { %v575_v24 = vadd.f32 %v574_v1, %v461_v0  ;;  %840 = vadd.xlane.f32.xlu2 %v839_v61 }
 0x145   :  { %v465_v17 = vpop.f32.mrf.mxu2  ;;  %v674_v11 = vadd.f32 %v673_v7, %v575_v24  ;;  %v762_v22 = vpop.f32.mrf.mxu1 }
 0x146   :  { %v466_v16 = vadd.f32 %v465_v17, %v2080_v32 }
 0x147   :  { %v1562_v5 = vpop.eup %1561  ;;  %v759_v44 = vadd.f32 %v758_v48, %v674_v11 }
 0x148   :  { %v804_v20 = vmul.f32 %v1562_v5, %v2113_v15 }
 0x149   :  { %1563 = vtanh.f32 %v759_v44 }
 0x14a   :  { %v580_v26 = vpop.f32.mrf.mxu3  ;;  %v842_v27 = vsel %vm74_vm0, %v804_v20, 0.0  ;;  %v681_v40 = vpop.f32.mrf.mxu0 }
 0x14b   :  { %v581_v54 = vadd.f32 %v580_v26, %v466_v16  ;;  %843 = vadd.xlane.f32.xlu1 %v842_v27 }
 0x14d   :  { %v470_v4 = vpop.f32.mrf.mxu2  ;;  %v678_v37 = vadd.f32 %v677_v12, %v581_v54  ;;  %v766_v47 = vpop.f32.mrf.mxu1 }
 0x14e   :  { %v471_v14 = vadd.f32 %v470_v4, %v2090_v51 }
 0x14f   :  { %v1564_v38 = vpop.eup %1563  ;;  %v763_v9 = vadd.f32 %v762_v22, %v678_v37 }
 0x150   :  { %v805_v28 = vmul.f32 %v1564_v38, %v2113_v15 }
 0x151   :  { %1565 = vtanh.f32 %v763_v9 }
 0x152   :  { %v586_v32 = vpop.f32.mrf.mxu3  ;;  %v845_v46 = vsel %vm74_vm0, %v805_v28, 0.0  ;;  %1567 = vtanh.f32 %v739_v45  ;;  %v685_v18 = vpop.f32.mrf.mxu0 }
 0x153   :  { %v587_v50 = vadd.f32 %v586_v32, %v471_v14  ;;  %846 = vadd.xlane.f32.xlu0 %v845_v46 }
 0x155   :  { %v682_v62 = vadd.f32 %v681_v40, %v587_v50  ;;  %v475_v31 = vpop.f32.mrf.mxu2  ;;  %v770_v53 = vpop.f32.mrf.mxu1 }
 0x156   :  { %v476_v59 = vadd.f32 %v475_v31, %v2102_v36 }
 0x157   :  { %v1566_v43 = vpop.eup %1565  ;;  %v767_v52 = vadd.f32 %v766_v47, %v682_v62 }
 0x158   :  { %v806_v56 = vmul.f32 %v1566_v43, %v2113_v15  ;;  %v1568_v57 = vpop.eup %1567 }
 0x159   :  { %1569 = vtanh.f32 %v767_v52  ;;  %v800_v34 = vmul.f32 %v1568_v57, %v2113_v15 }
 0x15a   :  { %v592_v3 = vpop.f32.mrf.mxu3  ;;  %v848_v51 = vsel %vm74_vm0, %v806_v56, 0.0 }
 0x15b   :  { %v593_v42 = vadd.f32 %v592_v3, %v476_v59  ;;  %849 = vadd.xlane.f32.xlu2 %v848_v51  ;;  %v830_v36 = vsel %vm74_vm0, %v800_v34, 0.0 }
 0x15d   :  { %v686_v63 = vadd.f32 %v685_v18, %v593_v42 }
 0x15f   :  { %v1570_v55 = vpop.eup %1569  ;;  %v771_v30 = vadd.f32 %v770_v53, %v686_v63 }
 0x160   :  { %v807_v6 = vmul.f32 %v1570_v55, %v2113_v15 }
 0x161   :  { %1571 = vtanh.f32 %v771_v30 }
 0x162   :  { %v851_v49 = vsel %vm74_vm0, %v807_v6, 0.0 }
 0x163   :  { %852 = vadd.xlane.f32.xlu1 %v851_v49  ;;  %831 = vadd.xlane.f32.xlu2 %v830_v36 }
 0x166   :  { %v811_v13 = vpop.xlane.xlu0 %810 }
 0x167   :  { %v1572_v58 = vpop.eup %1571  ;;  %v857_v10 = vrot.slane %v811_v13, 4 }
 0x168   :  { %v808_v21 = vmul.f32 %v1572_v58, %v2113_v15 }
 0x169   :  { %v858_v29 = vmax.f32 %v811_v13, %v857_v10 }
 0x16a   :  { %v854_v41 = vsel %vm74_vm0, %v808_v21, 0.0 }
 0x16b   :  { %v859_v19 = vrot.slane %v858_v29, 2  ;;  %855 = vadd.xlane.f32.xlu0 %v854_v41 }
 0x16d   :  { %v860_v7 = vmax.f32 %v858_v29, %v859_v19 }
 0x16e   :  { %v814_v39 = vpop.xlane.xlu0 %813 }
 0x16f   :  { %v861_v8 = vrot.slane %v860_v7, 1  ;;  %v863_v48 = vrot.slane %v814_v39, 4 }
 0x171   :  { %v862_v35 = vmax.f32 %v860_v7, %v861_v8  ;;  %v864_v60 = vmax.f32 %v814_v39, %v863_v48 }
 0x173   :  { %v953_v23 = vsub.f32 %v811_v13, %v862_v35  ;;  %v865_v0 = vrot.slane %v864_v60, 2 }
 0x175   :  { %v969_v1 = vmul.f32 1.442695, %v953_v23  ;;  %v866_v61 = vmax.f32 %v864_v60, %v865_v0 }
 0x176   :  { %v817_v24 = vpop.xlane.xlu2 %816 }
 0x177   :  { %1573 = vpow2.f32 %v969_v1  ;;  %v867_v17 = vrot.slane %v866_v61, 1  ;;  %v869_v11 = vrot.slane %v817_v24, 4 }
 0x179   :  { %v868_v15 = vmax.f32 %v866_v61, %v867_v17  ;;  %v870_v12 = vmax.f32 %v817_v24, %v869_v11 }
 0x17b   :  { %v954_v5 = vsub.f32 %v814_v39, %v868_v15  ;;  %v871_v33 = vrot.slane %v870_v12, 2 }
 0x17d   :  { %v2181_v44 = vpop.eup %1573  ;;  %v971_v20 = vmul.f32 1.442695, %v954_v5  ;;  %v872_v22 = vmax.f32 %v870_v12, %v871_v33 }
 0x17e   :  { %v1001_v25 = vrot.slane %v2181_v44, 4  ;;  %v820_v16 = vpop.xlane.xlu0 %819 }
 0x17f   :  { %1575 = vpow2.f32 %v971_v20  ;;  %v873_v26 = vrot.slane %v872_v22, 1  ;;  %v875_v27 = vrot.slane %v820_v16, 4 }
 0x180   :  { %v1002_v54 = vadd.f32 %v2181_v44, %v1001_v25 }
 0x181   :  { %v874_v2 = vmax.f32 %v872_v22, %v873_v26  ;;  %v876_v4 = vmax.f32 %v820_v16, %v875_v27 }
 0x182   :  { %v1003_v37 = vrot.slane %v1002_v54, 2 }
 0x183   :  { %v955_v38 = vsub.f32 %v817_v24, %v874_v2  ;;  %v877_v9 = vrot.slane %v876_v4, 2 }
 0x184   :  { %v1004_v28 = vadd.f32 %v1003_v37, %v1002_v54 }
 0x185   :  { %v2185_v40 = vpop.eup %1575  ;;  %v973_v45 = vmul.f32 1.442695, %v955_v38  ;;  %v878_v14 = vmax.f32 %v876_v4, %v877_v9 }
 0x186   :  { %v1005_v32 = vrot.slane %v1004_v28, 1  ;;  %v1007_v46 = vrot.slane %v2185_v40, 4  ;;  %v823_v47 = vpop.xlane.xlu2 %822 }
 0x187   :  { %1577 = vpow2.f32 %v973_v45  ;;  %v879_v50 = vrot.slane %v878_v14, 1  ;;  %v881_v62 = vrot.slane %v823_v47, 4 }
 0x188   :  { %v1008_v31 = vadd.f32 %v2185_v40, %v1007_v46  ;;  %v2189_v56 = vadd.f32 %v1005_v32, %v1004_v28 }
 0x189   :  { %v880_v43 = vmax.f32 %v878_v14, %v879_v50  ;;  %v882_v52 = vmax.f32 %v823_v47, %v881_v62 }
 0x18a   :  { %v1009_v59 = vrot.slane %v1008_v31, 2  ;;  %1579 = vrcp.f32 %v2189_v56  ;;  %v1108_v38 = vand.u32 2147483648, %v2189_v56  ;;  %vm1102_vm2 = vweird.f32 %v2189_v56 }
 0x18b   :  { %v956_v3 = vsub.f32 %v820_v16, %v880_v43  ;;  %v883_v51 = vrot.slane %v882_v52, 2  ;;  %v1106_v9 = vand.u32 2147483647, %v2189_v56 }
 0x18c   :  { %v1010_v53 = vadd.f32 %v1009_v59, %v1008_v31  ;;  %v1109_v50 = vor.u32 1.1754944e-38, %v1108_v38 }
 0x18d   :  { %v2191_v18 = vpop.eup %1577  ;;  %v975_v57 = vmul.f32 1.442695, %v956_v3  ;;  %v884_v42 = vmax.f32 %v882_v52, %v883_v51  ;;  %vm1107_vm4 = vcmp.eq.f32.partialorder %v1106_v9, 8.507059e+37 }
 0x18e   :  { %v1013_v63 = vrot.slane %v2191_v18, 4  ;;  %v826_v34 = vpop.xlane.xlu1 %825  ;;  %v1011_v36 = vrot.slane %v1010_v53, 1 }
 0x18f   :  { %v885_v55 = vrot.slane %v884_v42, 1  ;;  %v887_v30 = vrot.slane %v826_v34, 4  ;;  %1581 = vpow2.f32 %v975_v57 }
 0x190   :  { %v1014_v6 = vadd.f32 %v2191_v18, %v1013_v63  ;;  %v1580_v58 = vpop.eup %1579  ;;  %v2196_v41 = vadd.f32 %v1011_v36, %v1010_v53 }
 0x191   :  { %v886_v49 = vmax.f32 %v884_v42, %v885_v55  ;;  %v888_v13 = vmax.f32 %v826_v34, %v887_v30  ;;  %v1098_v8 = vmul.f32 %v1580_v58, %v2189_v56  ;;  %vm1103_vm1 = vweird.f32 %v1580_v58 }
 0x192   :  { %v1015_v10 = vrot.slane %v1014_v6, 2  ;;  %vm1104_vm3 = vmor %vm1102_vm2, %vm1103_vm1  ;;  %vm1117_vm6 = vweird.f32 %v2196_v41 }
 0x193   :  { %v957_v21 = vsub.f32 %v823_v47, %v886_v49  ;;  %v889_v29 = vrot.slane %v888_v13, 2  ;;  %v1099_v61 = vsub.f32 1.0, %v1098_v8 }
 0x194   :  { %v1016_v60 = vadd.f32 %v1015_v10, %v1014_v6  ;;  %v1637_v10 = vld [vmem:[#allocation2] sm:$0xff] }
 0x195   :  { %v977_v19 = vmul.f32 1.442695, %v957_v21  ;;  %v2198_v39 = vpop.eup %1581  ;;  %v890_v48 = vmax.f32 %v888_v13, %v889_v29  ;;  %v1100_v20 = vmul.f32 %v1580_v58, %v1099_v61  ;;  %v1121_v29 = vand.u32 2147483647, %v2196_v41 }
 0x196   :  { %v829_v7 = vpop.xlane.xlu0 %828  ;;  %v1019_v1 = vrot.slane %v2198_v39, 4  ;;  %v1017_v24 = vrot.slane %v1016_v60, 1 }
 0x197   :  { %v893_v35 = vrot.slane %v829_v7, 4  ;;  %1583 = vpow2.f32 %v977_v19  ;;  %v891_v23 = vrot.slane %v890_v48, 1  ;;  %v1101_v2 = vadd.f32 %v1580_v58, %v1100_v20 }
 0x198   :  { %1585 = vrcp.f32 %v2196_v41  ;;  %v1020_v12 = vadd.f32 %v2198_v39, %v1019_v1  ;;  %v2209_v16 = vadd.f32 %v1017_v24, %v1016_v60  ;;  %vm1122_vm8 = vcmp.eq.f32.partialorder %v1121_v29, 8.507059e+37 }
 0x199   :  { %v894_v0 = vmax.f32 %v829_v7, %v893_v35  ;;  %v892_v17 = vmax.f32 %v890_v48, %v891_v23  ;;  %v1105_v32 = vsel %vm1104_vm3, %v1580_v58, %v1101_v2 }
 0x19a   :  { %v1021_v54 = vrot.slane %v1020_v12, 2  ;;  %1587 = vrcp.f32 %v2209_v16  ;;  %v1110_v52 = vsel %vm1107_vm4, %v1109_v50, %v1105_v32  ;;  %vm1132_vm9 = vweird.f32 %v2209_v16  ;;  %v1638_v32 = vld [vmem:[#allocation2 + $0x8] sm:$0xff] }
 0x19b   :  { %v895_v11 = vrot.slane %v894_v0, 2  ;;  %v958_v5 = vsub.f32 %v826_v34, %v892_v17  ;;  %v1111_v42 = vmul.f32 %v2181_v44, %v1110_v52  ;;  %v1123_v44 = vand.u32 2147483648, %v2196_v41 }
 0x19c   :  { %v1022_v45 = vadd.f32 %v1021_v54, %v1020_v12  ;;  %v1136_v2 = vand.u32 2147483647, %v2209_v16 }
 0x19d   :  { %v2203_v15 = vpop.eup %1583  ;;  %v896_v33 = vmax.f32 %v894_v0, %v895_v11  ;;  %v979_v26 = vmul.f32 1.442695, %v958_v5  ;;  %v1337_v21 = vmul.f32 %v1637_v10, %v1111_v42  ;;  %v1124_v23 = vor.u32 1.1754944e-38, %v1123_v44 }
 0x19e   :  { %v1025_v22 = vrot.slane %v2203_v15, 4  ;;  %v2207_v25 = vpop.eup %1585  ;;  %v1023_v59 = vrot.slane %v1022_v45, 1  ;;  %vm1137_vm12 = vcmp.eq.f32.partialorder %v1136_v2, 8.507059e+37 }
 0x19f   :  { %v897_v27 = vrot.slane %v896_v33, 1  ;;  %v1113_v4 = vmul.f32 %v2207_v25, %v2196_v41  ;;  %1589 = vpow2.f32 %v979_v26  ;;  %vm1118_vm5 = vweird.f32 %v2207_v25 }
 0x1a0   :  { %v1026_v37 = vadd.f32 %v2203_v15, %v1025_v22  ;;  %v2218_v43 = vpop.eup %1587  ;;  %v2226_v34 = vadd.f32 %v1023_v59, %v1022_v45  ;;  %vm1119_vm7 = vmor %vm1117_vm6, %vm1118_vm5  ;;  %v1353_v1 = vsel %vm74_vm0, %v1337_v21, 0.0 }
 0x1a1   :  { %v898_v28 = vmax.f32 %v896_v33, %v897_v27  ;;  %v1114_v46 = vsub.f32 1.0, %v1113_v4  ;;  %v1128_v53 = vmul.f32 %v2218_v43, %v2209_v16  ;;  %v1354_v20 = vrot.slane %v1353_v1, 4 }
 0x1a2   :  { %v1027_v47 = vrot.slane %v1026_v37, 2  ;;  %vm1133_vm10 = vweird.f32 %v2218_v43  ;;  %v1138_v4 = vand.u32 2147483648, %v2209_v16  ;;  %vm1147_vm13 = vweird.f32 %v2226_v34 }
 0x1a3   :  { %v959_v31 = vsub.f32 %v829_v7, %v898_v28  ;;  %v1115_v56 = vmul.f32 %v2207_v25, %v1114_v46  ;;  %v1129_v19 = vsub.f32 1.0, %v1128_v53  ;;  %vm1134_vm11 = vmor %vm1132_vm9, %vm1133_vm10 }
 0x1a4   :  { %v1028_v57 = vadd.f32 %v1027_v47, %v1026_v37 }
 0x1a5   :  { %v2220_v51 = vpop.eup %1589  ;;  %v981_v63 = vmul.f32 1.442695, %v959_v31  ;;  %v1116_v49 = vadd.f32 %v2207_v25, %v1115_v56  ;;  %v1130_v41 = vmul.f32 %v2218_v43, %v1129_v19  ;;  %v1139_v31 = vor.u32 1.1754944e-38, %v1138_v4 }
 0x1a6   :  { %v835_v14 = vpop.xlane.xlu1 %834  ;;  %v1031_v55 = vrot.slane %v2220_v51, 4  ;;  %v1029_v36 = vrot.slane %v1028_v57, 1 }
 0x1a7   :  { %v905_v62 = vrot.slane %v835_v14, 4  ;;  %1591 = vpow2.f32 %v981_v63  ;;  %v1120_v35 = vsel %vm1119_vm7, %v2207_v25, %v1116_v49  ;;  %v1131_v26 = vadd.f32 %v2218_v43, %v1130_v41 }
 0x1a8   :  { %1593 = vrcp.f32 %v2226_v34  ;;  %v1032_v7 = vadd.f32 %v2220_v51, %v1031_v55  ;;  %v2241_v60 = vadd.f32 %v1029_v36, %v1028_v57  ;;  %v1125_v24 = vsel %vm1122_vm8, %v1124_v23, %v1120_v35 }
 0x1a9   :  { %v906_v3 = vmax.f32 %v835_v14, %v905_v62  ;;  %v1126_v25 = vmul.f32 %v2185_v40, %v1125_v24  ;;  %v1355_v40 = vadd.f32 %v1354_v20, %v1353_v1  ;;  %v1135_v47 = vsel %vm1134_vm11, %v2218_v43, %v1131_v26 }
 0x1aa   :  { %v1033_v17 = vrot.slane %v1032_v7, 2  ;;  %1595 = vrcp.f32 %v2241_v60  ;;  %v1140_v16 = vsel %vm1137_vm12, %v1139_v31, %v1135_v47  ;;  %v1151_v35 = vand.u32 2147483647, %v2226_v34 }
 0x1ab   :  { %v907_v30 = vrot.slane %v906_v3, 2  ;;  %v1338_v46 = vmul.f32 %v1638_v32, %v1126_v25  ;;  %v1356_v55 = vrot.slane %v1355_v40, 2  ;;  %v1153_v23 = vand.u32 2147483648, %v2226_v34 }
 0x1ac   :  { %v1034_v37 = vadd.f32 %v1033_v17, %v1032_v7  ;;  %vm2302_vm15 = vcmp.eq.f32.partialorder %v1151_v35, 8.507059e+37  ;;  %vm1162_vm3 = vweird.f32 %v2241_v60  ;;  %v1168_v31 = vand.u32 2147483648, %v2241_v60 }
 0x1ad   :  { %v908_v13 = vmax.f32 %v906_v3, %v907_v30  ;;  %v2247_v5 = vpop.eup %1591  ;;  %v1360_v30 = vsel %vm74_vm0, %v1338_v46, 0.0  ;;  %v1154_v2 = vor.u32 1.1754944e-38, %v1153_v23  ;;  %vm1481_vm11 = vcmask 1041409  }
 0x1ae   :  { %v2229_v6 = vpop.xlane.xlu1 %837  ;;  %v2250_v33 = vpop.eup %1593  ;;  %v1037_v38 = vrot.slane %v2247_v5, 4  ;;  %v1035_v52 = vrot.slane %v1034_v37, 1 }
 0x1af   :  { %v911_v58 = vrot.slane %v2229_v6, 4  ;;  %v909_v8 = vrot.slane %v908_v13, 1  ;;  %v1143_v9 = vmul.f32 %v2250_v33, %v2226_v34  ;;  %vm1148_vm14 = vweird.f32 %v2250_v33 }
 0x1b0   :  { %v1038_v59 = vadd.f32 %v2247_v5, %v1037_v38  ;;  %v2280_v36 = vadd.f32 %v1035_v52, %v1034_v37  ;;  %vm2309_vm1 = vmor %vm1147_vm13, %vm1148_vm14  ;;  %v1166_v38 = vand.u32 2147483647, %v2241_v60 }
 0x1b1   :  { %v912_v48 = vmax.f32 %v2229_v6, %v911_v58  ;;  %v910_v0 = vmax.f32 %v908_v13, %v909_v8  ;;  %v1144_v56 = vsub.f32 1.0, %v1143_v9  ;;  %v2287_v8 = vadd.f32 %v1356_v55, %v1355_v40 }
 0x1b2   :  { %v1039_v44 = vrot.slane %v1038_v59, 2  ;;  %vm2329_vm4 = vcmp.eq.f32.partialorder %v1166_v38, 8.507059e+37  ;;  %vm1177_vm6 = vweird.f32 %v2280_v36  ;;  %v1181_v37 = vand.u32 2147483647, %v2280_v36 }
 0x1b3   :  { %v913_v61 = vrot.slane %v912_v48, 2  ;;  %v961_v11 = vsub.f32 %v835_v14, %v910_v0  ;;  %v2267_v14 = vpop.eup %1595  ;;  %v1145_v10 = vmul.f32 %v2250_v33, %v1144_v56 }
 0x1b4   :  { %v1158_v42 = vmul.f32 %v2267_v14, %v2241_v60  ;;  %vm1163_vm2 = vweird.f32 %v2267_v14  ;;  %vm2408_vm9 = vcmp.eq.f32.partialorder %v1181_v37, 8.507059e+37 }
 0x1b5   :  { %v985_v22 = vmul.f32 1.442695, %v961_v11  ;;  %v914_v27 = vmax.f32 %v912_v48, %v913_v61  ;;  %v1361_v48 = vrot.slane %v1360_v30, 4  ;;  %v1639_v61 = vld [vmem:[#allocation2 + $0x10] sm:$0xff]  ;;  %v1146_v17 = vadd.f32 %v2250_v33, %v1145_v10  ;;  %vm2337_vm5 = vmor %vm1162_vm3, %vm1163_vm2 }
 0x1b6   :  { %v2245_v12 = vpop.xlane.xlu2 %840  ;;  %v1159_v21 = vsub.f32 1.0, %v1158_v42  ;;  %v1169_v10 = vor.u32 1.1754944e-38, %v1168_v31 }
 0x1b7   :  { %v917_v54 = vrot.slane %v2245_v12, 4  ;;  %1597 = vpow2.f32 %v985_v22  ;;  %v915_v28 = vrot.slane %v914_v27, 1  ;;  %v1150_v40 = vsel %vm2309_vm1, %v2250_v33, %v1146_v17 }
 0x1b8   :  { %v1160_v20 = vmul.f32 %v2267_v14, %v1159_v21  ;;  %v1155_v33 = vsel %vm2302_vm15, %v1154_v2, %v1150_v40  ;;  %v1358_v17 = vrot.slane %v2287_v8, 1 }
 0x1b9   :  { %v918_v45 = vmax.f32 %v2245_v12, %v917_v54  ;;  %v916_v50 = vmax.f32 %v914_v27, %v915_v28 }
 0x1ba   :  { %v1161_v34 = vadd.f32 %v2267_v14, %v1160_v20 }
 0x1bb   :  { %v919_v62 = vrot.slane %v918_v45, 2  ;;  %v962_v57 = vsub.f32 %v2229_v6, %v916_v50  ;;  %v1141_v6 = vmul.f32 %v2191_v18, %v1140_v16  ;;  %v1040_v18 = vadd.f32 %v1039_v44, %v1038_v59 }
 0x1bd   :  { %v920_v53 = vmax.f32 %v918_v45, %v919_v62  ;;  %v2277_v43 = vpop.eup %1597  ;;  %v987_v49 = vmul.f32 1.442695, %v962_v57  ;;  %v1339_v24 = vmul.f32 %v1639_v61, %v1141_v6  ;;  %v1041_v9 = vrot.slane %v1040_v18, 1 }
 0x1be   :  { %v2271_v3 = vpop.xlane.xlu1 %843  ;;  %v1049_v29 = vrot.slane %v2277_v43, 4  ;;  %v1156_v6 = vmul.f32 %v2198_v39, %v1155_v33  ;;  %v1183_v33 = vand.u32 2147483648, %v2280_v36 }
 0x1bf   :  { %v923_v63 = vrot.slane %v2271_v3, 4  ;;  %v921_v13 = vrot.slane %v920_v53, 1  ;;  %1599 = vpow2.f32 %v987_v49  ;;  %v1367_v45 = vsel %vm74_vm0, %v1339_v24, 0.0 }
 0x1c0   :  { %1601 = vrcp.f32 %v2280_v36  ;;  %v1050_v22 = vadd.f32 %v2277_v43, %v1049_v29  ;;  %v2333_v16 = vadd.f32 %v1041_v9, %v1040_v18  ;;  %v1165_v49 = vsel %vm2337_vm5, %v2267_v14, %v1161_v34 }
 0x1c1   :  { %v924_v58 = vmax.f32 %v2271_v3, %v923_v63  ;;  %v922_v19 = vmax.f32 %v920_v53, %v921_v13  ;;  %v1368_v53 = vrot.slane %v1367_v45, 4  ;;  %v1170_v14 = vsel %vm2329_vm4, %v1169_v10, %v1165_v49 }
 0x1c2   :  { %v1051_v50 = vrot.slane %v1050_v22, 2  ;;  %vm1192_vm10 = vweird.f32 %v2333_v16 }
 0x1c3   :  { %v925_v7 = vrot.slane %v924_v58, 2  ;;  %v963_v0 = vsub.f32 %v2245_v12, %v922_v19  ;;  %v1362_v12 = vadd.f32 %v1361_v48, %v1360_v30  ;;  %v1369_v35 = vadd.f32 %v1368_v53, %v1367_v45 }
 0x1c4   :  { %v1052_v44 = vadd.f32 %v1051_v50, %v1050_v22 }
 0x1c5   :  { %v926_v1 = vmax.f32 %v924_v58, %v925_v7  ;;  %v989_v25 = vmul.f32 1.442695, %v963_v0  ;;  %v2300_v27 = vpop.eup %1599  ;;  %v1363_v56 = vrot.slane %v1362_v12, 2  ;;  %v1370_v54 = vrot.slane %v1369_v35, 2 }
 0x1c6   :  { %v2293_v41 = vpop.xlane.xlu0 %846  ;;  %v1055_v28 = vrot.slane %v2300_v27, 4  ;;  %v2319_v47 = vpop.eup %1601  ;;  %v1053_v18 = vrot.slane %v1052_v44, 1 }
 0x1c7   :  { %v929_v11 = vrot.slane %v2293_v41, 4  ;;  %v927_v26 = vrot.slane %v926_v1, 1  ;;  %1603 = vpow2.f32 %v989_v25  ;;  %v1173_v60 = vmul.f32 %v2319_v47, %v2280_v36 }
 0x1c8   :  { %v1056_v62 = vadd.f32 %v2300_v27, %v1055_v28  ;;  %v1364_v48 = vadd.f32 %v1363_v56, %v1362_v12  ;;  %v2368_v38 = vadd.f32 %v1053_v18, %v1052_v44  ;;  %vm1178_vm7 = vweird.f32 %v2319_v47 }
 0x1c9   :  { %v930_v4 = vmax.f32 %v2293_v41, %v929_v11  ;;  %v928_v32 = vmax.f32 %v926_v1, %v927_v26  ;;  %v1174_v23 = vsub.f32 1.0, %v1173_v60  ;;  %v1640_v1 = vld [vmem:[#allocation2 + $0x18] sm:$0xff]  ;;  %v1171_v11 = vmul.f32 %v2203_v15, %v1170_v14  ;;  %vm2393_vm8 = vmor %vm1177_vm6, %vm1178_vm7 }
 0x1ca   :  { %v1340_v61 = vmul.f32 %v1640_v1, %v1156_v6  ;;  %v2403_v6 = vadd.f32 %v1370_v54, %v1369_v35  ;;  %v1184_v35 = vor.u32 1.1754944e-38, %v1183_v33  ;;  %vm1222_vm15 = vweird.f32 %v2368_v38 }
 0x1cb   :  { %v931_v46 = vrot.slane %v930_v4, 2  ;;  %v964_v52 = vsub.f32 %v2271_v3, %v928_v32  ;;  %v1057_v3 = vrot.slane %v1056_v62, 2  ;;  %v1175_v2 = vmul.f32 %v2319_v47, %v1174_v23 }
 0x1cc   :  { %v1374_v9 = vsel %vm74_vm0, %v1340_v61, 0.0 }
 0x1cd   :  { %v932_v59 = vmax.f32 %v930_v4, %v931_v46  ;;  %v991_v55 = vmul.f32 1.442695, %v964_v52  ;;  %v2343_v30 = vpop.eup %1603  ;;  %v1058_v29 = vadd.f32 %v1057_v3, %v1056_v62  ;;  %v1641_v46 = vld [vmem:[#allocation2 + $0x20] sm:$0xff]  ;;  %v1176_v31 = vadd.f32 %v2319_v47, %v1175_v2 }
 0x1ce   :  { %v2335_v42 = vpop.xlane.xlu2 %849  ;;  %v1061_v21 = vrot.slane %v2343_v30, 4  ;;  %v1341_v34 = vmul.f32 %v1641_v46, %v1171_v11  ;;  %v1375_v63 = vrot.slane %v1374_v9, 4 }
 0x1cf   :  { %v933_v13 = vrot.slane %v932_v59, 1  ;;  %v935_v58 = vrot.slane %v2335_v42, 4  ;;  %1605 = vpow2.f32 %v991_v55  ;;  %v1059_v20 = vrot.slane %v1058_v29, 1 }
 0x1d0   :  { %1607 = vrcp.f32 %v2333_v16  ;;  %v1062_v24 = vadd.f32 %v2343_v30, %v1061_v21  ;;  %v1381_v21 = vsel %vm74_vm0, %v1341_v34, 0.0 }
 0x1d1   :  { %v934_v19 = vmax.f32 %v932_v59, %v933_v13  ;;  %v936_v7 = vmax.f32 %v2335_v42, %v935_v58  ;;  %v2376_v50 = vadd.f32 %v1059_v20, %v1058_v29  ;;  %v2399_v13 = vadd.f32 %v1358_v17, %v2287_v8 }
 0x1d2   :  { %v1063_v28 = vrot.slane %v1062_v24, 2 }
 0x1d3   :  { %v965_v0 = vsub.f32 %v2293_v41, %v934_v19  ;;  %v937_v39 = vrot.slane %v936_v7, 2  ;;  %v1365_v41 = vrot.slane %v1364_v48, 1  ;;  %vm1237_vm4 = vweird.f32 %v2376_v50 }
 0x1d4   :  { %v1064_v60 = vadd.f32 %v1063_v28, %v1062_v24  ;;  %v1198_v28 = vand.u32 2147483648, %v2333_v16 }
 0x1d5   :  { %v993_v22 = vmul.f32 1.442695, %v965_v0  ;;  %v938_v25 = vmax.f32 %v936_v7, %v937_v39  ;;  %v2361_v12 = vpop.eup %1605  ;;  %v2401_v58 = vadd.f32 %v1365_v41, %v1364_v48  ;;  %v1376_v48 = vadd.f32 %v1375_v63, %v1374_v9 }
 0x1d6   :  { %v2359_v26 = vpop.xlane.xlu1 %852  ;;  %v2365_v4 = vpop.eup %1607  ;;  %v1067_v15 = vrot.slane %v2361_v12, 4  ;;  %v1065_v14 = vrot.slane %v1064_v60, 1  ;;  %v1372_v0 = vrot.slane %v2403_v6, 1  ;;  %v1382_v39 = vrot.slane %v1381_v21, 4 }
 0x1d7   :  { %1609 = vpow2.f32 %v993_v22  ;;  %v939_v45 = vrot.slane %v938_v25, 1  ;;  %v941_v40 = vrot.slane %v2359_v26, 4  ;;  %v2373_v32 = vpop.xlane.xlu2 %831  ;;  %v1188_v52 = vmul.f32 %v2365_v4, %v2333_v16 }
 0x1d8   :  { %v1068_v62 = vadd.f32 %v2361_v12, %v1067_v15  ;;  %1611 = vrcp.f32 %v2368_v38  ;;  %v899_v53 = vrot.slane %v2373_v32, 4  ;;  %v2427_v54 = vadd.f32 %v1065_v14, %v1064_v60 }
 0x1d9   :  { %v940_v59 = vmax.f32 %v938_v25, %v939_v45  ;;  %v942_v56 = vmax.f32 %v2359_v26, %v941_v40  ;;  %1613 = vrcp.f32 %v2376_v50  ;;  %v1189_v36 = vsub.f32 1.0, %v1188_v52 }
 0x1da   :  { %v1069_v57 = vrot.slane %v1068_v62, 2  ;;  %v900_v7 = vmax.f32 %v2373_v32, %v899_v53  ;;  %v1377_v37 = vrot.slane %v1376_v48, 2  ;;  %v1196_v9 = vand.u32 2147483647, %v2333_v16  ;;  %v1642_v53 = vld [vmem:[#allocation2 + $0x28] sm:$0xff] }
 0x1db   :  { %v966_v3 = vsub.f32 %v2335_v42, %v940_v59  ;;  %v943_v55 = vrot.slane %v942_v56, 2  ;;  %v1180_v42 = vsel %vm2393_vm8, %v2319_v47, %v1176_v31  ;;  %v1190_v61 = vmul.f32 %v2365_v4, %v1189_v36 }
 0x1dc   :  { %v1070_v29 = vadd.f32 %v1069_v57, %v1068_v62  ;;  %v1185_v1 = vsel %vm2408_vm9, %v1184_v35, %v1180_v42  ;;  %v901_v22 = vrot.slane %v900_v7, 2  ;;  %v1383_v45 = vadd.f32 %v1382_v39, %v1381_v21 }
 0x1dd   :  { %v2387_v49 = vpop.eup %1609  ;;  %v995_v8 = vmul.f32 1.442695, %v966_v3  ;;  %v944_v23 = vmax.f32 %v942_v56, %v943_v55  ;;  %v1186_v15 = vmul.f32 %v2220_v51, %v1185_v1  ;;  %v1191_v40 = vadd.f32 %v2365_v4, %v1190_v61 }
 0x1de   :  { %v1073_v19 = vrot.slane %v2387_v49, 4  ;;  %v2415_v18 = vpop.eup %1611  ;;  %v1071_v24 = vrot.slane %v1070_v29, 1  ;;  %v2429_v41 = vpop.xlane.xlu0 %855  ;;  %vm1193_vm12 = vweird.f32 %v2365_v4  ;;  %v902_v51 = vmax.f32 %v900_v7, %v901_v22 }
 0x1df   :  { %1615 = vpow2.f32 %v995_v8  ;;  %v945_v17 = vrot.slane %v944_v23, 1  ;;  %v2422_v11 = vpop.eup %1613  ;;  %v1218_v25 = vmul.f32 %v2415_v18, %v2368_v38  ;;  %v947_v59 = vrot.slane %v2429_v41, 4  ;;  %vm2450_vm13 = vmor %vm1192_vm10, %vm1193_vm12 }
 0x1e0   :  { %v1074_v47 = vadd.f32 %v2387_v49, %v1073_v19  ;;  %v1233_v46 = vmul.f32 %v2422_v11, %v2376_v50  ;;  %v2438_v34 = vadd.f32 %v1071_v24, %v1070_v29  ;;  %1617 = vrcp.f32 %v2427_v54 }
 0x1e1   :  { %v946_v2 = vmax.f32 %v944_v23, %v945_v17  ;;  %v1219_v56 = vsub.f32 1.0, %v1218_v25  ;;  %v2446_v57 = vadd.f32 %v1377_v37, %v1376_v48  ;;  %v1342_v63 = vmul.f32 %v1642_v53, %v1186_v15 }
 0x1e2   :  { %v1075_v20 = vrot.slane %v1074_v47, 2  ;;  %v1384_v55 = vrot.slane %v1383_v45, 2  ;;  %v1195_v44 = vsel %vm2450_vm13, %v2365_v4, %v1191_v40  ;;  %v1234_v42 = vsub.f32 1.0, %v1233_v46 }
 0x1e3   :  { %v967_v52 = vsub.f32 %v2359_v26, %v946_v2  ;;  %1619 = vrcp.f32 %v2438_v34  ;;  %v903_v16 = vrot.slane %v902_v51, 1  ;;  %v948_v21 = vmax.f32 %v2429_v41, %v947_v59 }
 0x1e4   :  { %v1076_v31 = vadd.f32 %v1075_v20, %v1074_v47  ;;  %v1199_v29 = vor.u32 1.1754944e-38, %v1198_v28  ;;  %v1220_v19 = vmul.f32 %v2415_v18, %v1219_v56  ;;  %v1228_v8 = vand.u32 2147483648, %v2368_v38 }
 0x1e5   :  { %v2440_v62 = vpop.eup %1615  ;;  %v997_v26 = vmul.f32 1.442695, %v967_v52  ;;  %v2465_v7 = vadd.f32 %v1372_v0, %v2403_v6  ;;  %vm1197_vm14 = vcmp.eq.f32.partialorder %v1196_v9, 8.507059e+37  ;;  %v1379_v4 = vrot.slane %v2446_v57, 1 }
 0x1e6   :  { %v1079_v33 = vrot.slane %v2440_v62, 4  ;;  %v1077_v3 = vrot.slane %v1076_v31, 1  ;;  %v2472_v48 = vsel %vm1481_vm11, %v2401_v58, %v2399_v13  ;;  %v2474_v35 = vpop.eup %1617  ;;  %v1200_v14 = vsel %vm1197_vm14, %v1199_v29, %v1195_v44 }
 0x1e7   :  { %1621 = vpow2.f32 %v997_v26  ;;  %v1235_v23 = vmul.f32 %v2422_v11, %v1234_v42  ;;  %v2477_v47 = vadd.f32 %v1384_v55, %v1383_v45  ;;  %v2480_v6 = vsel %vm74_vm0, %v1342_v63, 0.0 }
 0x1e8   :  { %v1080_v10 = vadd.f32 %v2440_v62, %v1079_v33  ;;  %v2459_v36 = vadd.f32 %v1077_v3, %v1076_v31  ;;  %v904_v39 = vmax.f32 %v902_v51, %v903_v16  ;;  %v949_v1 = vrot.slane %v948_v21, 2 }
 0x1e9   :  { %v2483_v61 = vpop.eup %1619  ;;  %v1221_v13 = vadd.f32 %v2415_v18, %v1220_v19  ;;  %vm1223_vm1 = vweird.f32 %v2415_v18  ;;  %v1226_v58 = vand.u32 2147483647, %v2368_v38  ;;  %v1229_v24 = vor.u32 1.1754944e-38, %v1228_v8 }
 0x1ea   :  { %1623 = vrcp.f32 %v2459_v36  ;;  %v1081_v0 = vrot.slane %v1080_v10, 2  ;;  %v1248_v20 = vmul.f32 %v2474_v35, %v2427_v54  ;;  %v960_v25 = vsub.f32 %v2373_v32, %v904_v39  ;;  %vm2501_vm3 = vmor %vm1222_vm15, %vm1223_vm1 }
 0x1eb   :  { %v950_v2 = vmax.f32 %v948_v21, %v949_v1  ;;  %v1236_v37 = vadd.f32 %v2422_v11, %v1235_v23  ;;  %vm1238_vm2 = vweird.f32 %v2422_v11  ;;  %v1243_v15 = vand.u32 2147483648, %v2376_v50 }
 0x1ec   :  { %v1082_v22 = vadd.f32 %v1081_v0, %v1080_v10  ;;  %v1263_v32 = vmul.f32 %v2483_v61, %v2438_v34  ;;  %v983_v46 = vmul.f32 1.442695, %v960_v25  ;;  %v1225_v52 = vsel %vm2501_vm3, %v2415_v18, %v1221_v13  ;;  %vm2513_vm5 = vmor %vm1237_vm4, %vm1238_vm2 }
 0x1ed   :  { %v2488_v17 = vpop.eup %1621  ;;  %v951_v31 = vrot.slane %v950_v2, 1  ;;  %v1241_v51 = vand.u32 2147483647, %v2376_v50  ;;  %v1249_v56 = vsub.f32 1.0, %v1248_v20  ;;  %vm1227_vm6 = vcmp.eq.f32.partialorder %v1226_v58, 8.507059e+37 }
 0x1ee   :  { %v1085_v9 = vrot.slane %v2488_v17, 4  ;;  %v1083_v40 = vrot.slane %v1082_v22, 1  ;;  %1625 = vpow2.f32 %v983_v46  ;;  %v1240_v18 = vsel %vm2513_vm5, %v2422_v11, %v1236_v37 }
 0x1ef   :  { %v952_v50 = vmax.f32 %v950_v2, %v951_v31  ;;  %v1230_v60 = vsel %vm1227_vm6, %v1229_v24, %v1225_v52  ;;  %v1244_v3 = vor.u32 1.1754944e-38, %v1243_v15  ;;  %v1264_v26 = vsub.f32 1.0, %v1263_v32  ;;  %v1643_v15 = vld [vmem:[#allocation2 + $0x48] sm:$0xff] }
 0x1f0   :  { %v2497_v28 = vpop.eup %1623  ;;  %v1086_v38 = vadd.f32 %v2488_v17, %v1085_v9  ;;  %v2519_v53 = vadd.f32 %v1083_v40, %v1082_v22  ;;  %v2526_v55 = vmul.f32 %v2247_v5, %v1200_v14  ;;  %vm1242_vm7 = vcmp.eq.f32.partialorder %v1241_v51, 8.507059e+37 }
 0x1f1   :  { %v1278_v33 = vmul.f32 %v2497_v28, %v2459_v36  ;;  %v1389_v42 = vrot.slane %v2480_v6, 4  ;;  %v1245_v10 = vsel %vm1242_vm7, %v1244_v3, %v1240_v18  ;;  %v1250_v16 = vmul.f32 %v2474_v35, %v1249_v56 }
 0x1f2   :  { %v1087_v63 = vrot.slane %v1086_v38, 2  ;;  %1627 = vrcp.f32 %v2519_v53  ;;  %v968_v11 = vsub.f32 %v2429_v41, %v952_v50  ;;  %v2532_v29 = vmul.f32 %v2277_v43, %v1230_v60 }
 0x1f3   :  { %v1279_v21 = vsub.f32 1.0, %v1278_v33  ;;  %v1256_v19 = vand.u32 2147483647, %v2427_v54  ;;  %v1258_v8 = vand.u32 2147483648, %v2427_v54  ;;  %vm1252_vm8 = vweird.f32 %v2427_v54 }
 0x1f4   :  { %v1088_v44 = vadd.f32 %v1087_v63, %v1086_v38  ;;  %v2536_v5 = vpop.eup %1625  ;;  %v1265_v14 = vmul.f32 %v2483_v61, %v1264_v26  ;;  %v1271_v0 = vand.u32 2147483647, %v2438_v34  ;;  %v999_v39 = vmul.f32 1.442695, %v968_v11 }
 0x1f5   :  { %v1246_v1 = vmul.f32 %v2300_v27, %v1245_v10  ;;  %v1273_v41 = vand.u32 2147483648, %v2438_v34  ;;  %v1043_v13 = vrot.slane %v2536_v5, 4  ;;  %v1251_v24 = vadd.f32 %v2474_v35, %v1250_v16 }
 0x1f6   :  { %v1089_v23 = vrot.slane %v1088_v44, 1  ;;  %vm1253_vm9 = vweird.f32 %v2474_v35  ;;  %v1280_v20 = vmul.f32 %v2497_v28, %v1279_v21  ;;  %1629 = vpow2.f32 %v999_v39 }
 0x1f7   :  { %vm2551_vm10 = vcmp.eq.f32.partialorder %v1256_v19, 8.507059e+37  ;;  %v1259_v27 = vor.u32 1.1754944e-38, %v1258_v8  ;;  %v1266_v2 = vadd.f32 %v2483_v61, %v1265_v14  ;;  %vm1267_vm12 = vweird.f32 %v2438_v34  ;;  %vm2564_vm14 = vmor %vm1252_vm8, %vm1253_vm9 }
 0x1f8   :  { %v2543_v43 = vadd.f32 %v1089_v23, %v1088_v44  ;;  %v2546_v58 = vpop.eup %1627  ;;  %vm1268_vm13 = vweird.f32 %v2483_v61  ;;  %v1044_v37 = vadd.f32 %v2536_v5, %v1043_v13  ;;  %v1346_v9 = vmul.f32 %v1643_v15, %v1246_v1 }
 0x1f9   :  { %v1293_v25 = vmul.f32 %v2546_v58, %v2519_v53  ;;  %vm2568_vm15 = vcmp.eq.f32.partialorder %v1271_v0, 8.507059e+37  ;;  %v1274_v40 = vor.u32 1.1754944e-38, %v1273_v41  ;;  %v1255_v34 = vsel %vm2564_vm14, %v2474_v35, %v1251_v24  ;;  %vm2577_vm2 = vmor %vm1267_vm12, %vm1268_vm13 }
 0x1fa   :  { %1631 = vrcp.f32 %v2543_v43  ;;  %v1281_v31 = vadd.f32 %v2497_v28, %v1280_v20  ;;  %vm1283_vm1 = vweird.f32 %v2497_v28  ;;  %v1045_v52 = vrot.slane %v1044_v37, 2 }
 0x1fb   :  { %v1294_v46 = vsub.f32 1.0, %v1293_v25  ;;  %vm1282_vm3 = vweird.f32 %v2459_v36  ;;  %v1286_v51 = vand.u32 2147483647, %v2459_v36  ;;  %v1288_v38 = vand.u32 2147483648, %v2459_v36 }
 0x1fc   :  { %v2585_v56 = vpop.eup %1629  ;;  %v1270_v35 = vsel %vm2577_vm2, %v2483_v61, %v1266_v2  ;;  %vm1298_vm4 = vweird.f32 %v2546_v58  ;;  %v1301_v33 = vand.u32 2147483647, %v2519_v53  ;;  %v1046_v18 = vadd.f32 %v1045_v52, %v1044_v37  ;;  %vm2594_vm5 = vmor %vm1282_vm3, %vm1283_vm1  ;;  %v1647_v52 = vld [vmem:[#allocation2 + $0x58] sm:$0xff] }
 0x1fd   :  { %v1295_v59 = vmul.f32 %v2546_v58, %v1294_v46  ;;  %v1260_v50 = vsel %vm2551_vm10, %v1259_v27, %v1255_v34  ;;  %v1303_v3 = vand.u32 2147483648, %v2519_v53  ;;  %v1091_v26 = vrot.slane %v2585_v56, 4  ;;  %v1645_v27 = vld [vmem:[#allocation2 + $0x40] sm:$0xff] }
 0x1fe   :  { %v1285_v61 = vsel %vm2594_vm5, %v2497_v28, %v1281_v31  ;;  %vm1297_vm6 = vweird.f32 %v2519_v53  ;;  %v1047_v10 = vrot.slane %v1046_v18, 1  ;;  %v1275_v16 = vsel %vm2568_vm15, %v1274_v40, %v1270_v35  ;;  %v1649_v35 = vld [vmem:[#allocation2 + $0x68] sm:$0xff] }
 0x1ff   :  { %v1296_v36 = vadd.f32 %v2546_v58, %v1295_v59  ;;  %vm1287_vm7 = vcmp.eq.f32.partialorder %v1286_v51, 8.507059e+37  ;;  %v1289_v21 = vor.u32 1.1754944e-38, %v1288_v38  ;;  %vm2610_vm8 = vmor %vm1297_vm6, %vm1298_vm4  ;;  %v1092_v19 = vadd.f32 %v2585_v56, %v1091_v26 }
 0x200   :  { %v1632_v63 = vpop.eup %1631  ;;  %vm1483_vm9 = vcmask 1042434   ;;  %vm1302_vm10 = vcmp.eq.f32.partialorder %v1301_v33, 8.507059e+37  ;;  %v2618_v8 = vadd.f32 %v1047_v10, %v1046_v18  ;;  %v1304_v14 = vor.u32 1.1754944e-38, %v1303_v3 }
 0x201   :  { %v1308_v44 = vmul.f32 %v1632_v63, %v2543_v43  ;;  %v1300_v28 = vsel %vm2610_vm8, %v2546_v58, %v1296_v36  ;;  %v1290_v23 = vsel %vm1287_vm7, %v1289_v21, %v1285_v61  ;;  %v1318_v0 = vand.u32 2147483648, %v2543_v43  ;;  %v1644_v58 = vld [vmem:[#allocation2 + $0x30] sm:$0xff] }
 0x202   :  { %v1093_v39 = vrot.slane %v1092_v19, 2  ;;  %vm1313_vm12 = vweird.f32 %v1632_v63  ;;  %v1316_v41 = vand.u32 2147483647, %v2543_v43  ;;  %1633 = vrcp.f32 %v2618_v8 }
 0x203   :  { %v1309_v53 = vsub.f32 1.0, %v1308_v44  ;;  %v1261_v13 = vmul.f32 %v2343_v30, %v1260_v50  ;;  %v1305_v24 = vsel %vm1302_vm10, %v1304_v14, %v1300_v28  ;;  %v1343_v22 = vmul.f32 %v1644_v58, %v2526_v55 }
 0x204   :  { %v1094_v20 = vadd.f32 %v1093_v39, %v1092_v19  ;;  %v1345_v25 = vmul.f32 %v1645_v27, %v2532_v29  ;;  %v1276_v2 = vmul.f32 %v2361_v12, %v1275_v16  ;;  %vm1312_vm13 = vweird.f32 %v2543_v43  ;;  %v1646_v12 = vld [vmem:[#allocation2 + $0x50] sm:$0xff] }
 0x205   :  { %v1310_v1 = vmul.f32 %v1632_v63, %v1309_v53  ;;  %v1416_v15 = vsel %vm74_vm0, %v1346_v9, 0.0  ;;  %v1291_v45 = vmul.f32 %v2387_v49, %v1290_v23  ;;  %vm1314_vm14 = vmor %vm1312_vm13, %vm1313_vm12  ;;  %v1319_v30 = vor.u32 1.1754944e-38, %v1318_v0 }
 0x206   :  { %v1095_v32 = vrot.slane %v1094_v20, 1  ;;  %v1306_v40 = vmul.f32 %v2440_v62, %v1305_v24  ;;  %vm1317_vm15 = vcmp.eq.f32.partialorder %v1316_v41, 8.507059e+37  ;;  %v1390_v55 = vadd.f32 %v1389_v42, %v2480_v6  ;;  %v1648_v42 = vld [vmem:[#allocation2 + $0x60] sm:$0xff] }
 0x207   :  { %v1311_v37 = vadd.f32 %v1632_v63, %v1310_v1  ;;  %v1347_v29 = vmul.f32 %v1646_v12, %v1261_v13  ;;  %v1395_v9 = vsel %vm74_vm0, %v1343_v22, 0.0  ;;  %v1417_v31 = vrot.slane %v1416_v15, 4 }
 0x208   :  { %v2635_v43 = vadd.f32 %v1095_v32, %v1094_v20  ;;  %v1634_v49 = vpop.eup %1633  ;;  %v1348_v54 = vmul.f32 %v1647_v52, %v1276_v2  ;;  %v2642_v62 = vadd.f32 %v1379_v4, %v2446_v57  ;;  %v1409_v6 = vsel %vm74_vm0, %v1345_v25, 0.0  ;;  %v1650_v4 = vld [vmem:[#allocation2 + $0x70] sm:$0xff] }
 0x209   :  { %v1315_v46 = vsel %vm1314_vm14, %v1632_v63, %v1311_v37  ;;  %v1349_v38 = vmul.f32 %v1648_v42, %v1291_v45  ;;  %v1203_v59 = vmul.f32 %v1634_v49, %v2618_v8  ;;  %v1350_v33 = vmul.f32 %v1649_v35, %v1306_v40 }
 0x20a   :  { %v1320_v34 = vsel %vm1317_vm15, %v1319_v30, %v1315_v46  ;;  %1635 = vrcp.f32 %v2635_v43  ;;  %v1391_v18 = vrot.slane %v1390_v55, 2  ;;  %v1396_v63 = vrot.slane %v1395_v9, 4 }
 0x20b   :  { %v1321_v51 = vmul.f32 %v2488_v17, %v1320_v34  ;;  %v2650_v17 = vsel %vm1483_vm9, %v2465_v7, %v2472_v48  ;;  %v1423_v57 = vsel %vm74_vm0, %v1347_v29, 0.0  ;;  %v1204_v60 = vsub.f32 1.0, %v1203_v59 }
 0x20c   :  { %v1386_v36 = vrot.slane %v2477_v47, 1  ;;  %v1410_v3 = vrot.slane %v1409_v6, 4  ;;  %v1418_v26 = vadd.f32 %v1417_v31, %v1416_v15  ;;  %v1430_v61 = vsel %vm74_vm0, %v1348_v54, 0.0 }
 0x20d   :  { %v1351_v50 = vmul.f32 %v1650_v4, %v1321_v51  ;;  %v1213_v44 = vand.u32 2147483648, %v2618_v8  ;;  %v1205_v10 = vmul.f32 %v1634_v49, %v1204_v60  ;;  %vm1208_vm1 = vweird.f32 %v1634_v49 }
 0x20e   :  { %v1211_v16 = vand.u32 2147483647, %v2618_v8  ;;  %v1437_v7 = vsel %vm74_vm0, %v1349_v38, 0.0  ;;  %v1424_v48 = vrot.slane %v1423_v57, 4  ;;  %v2658_v21 = vadd.f32 %v1391_v18, %v1390_v55  ;;  %v1651_v55 = vld [vmem:[#allocation2 + $0x38] sm:$0xff] }
 0x20f   :  { %v1397_v11 = vadd.f32 %v1396_v63, %v1395_v9  ;;  %v1444_v19 = vsel %vm74_vm0, %v1350_v33, 0.0  ;;  %v1431_v53 = vrot.slane %v1430_v61, 4  ;;  %v1206_v23 = vadd.f32 %v1634_v49, %v1205_v10 }
 0x210   :  { %v1636_v28 = vpop.eup %1635  ;;  %vm1207_vm2 = vweird.f32 %v2618_v8  ;;  %v1451_v14 = vsel %vm74_vm0, %v1351_v50, 0.0  ;;  %v1411_v0 = vadd.f32 %v1410_v3, %v1409_v6  ;;  %v1214_v39 = vor.u32 1.1754944e-38, %v1213_v44 }
 0x211   :  { %vm1209_vm3 = vmor %vm1207_vm2, %vm1208_vm1  ;;  %v1323_v1 = vmul.f32 %v1636_v28, %v2635_v43  ;;  %v1438_v41 = vrot.slane %v1437_v7, 4  ;;  %vm1485_vm4 = vcmask 1043459   ;;  %v1419_v13 = vrot.slane %v1418_v26, 2 }
 0x212   :  { %v1210_v24 = vsel %vm1209_vm3, %v1634_v49, %v1206_v23  ;;  %vm1212_vm5 = vcmp.eq.f32.partialorder %v1211_v16, 8.507059e+37  ;;  %v1445_v20 = vrot.slane %v1444_v19, 4  ;;  %v1425_v58 = vadd.f32 %v1424_v48, %v1423_v57 }
 0x213   :  { %v1215_v22 = vsel %vm1212_vm5, %v1214_v39, %v1210_v24  ;;  %v1324_v27 = vsub.f32 1.0, %v1323_v1  ;;  %v1452_v25 = vrot.slane %v1451_v14, 4  ;;  %v1432_v2 = vadd.f32 %v1431_v53, %v1430_v61 }
 0x214   :  { %v1216_v8 = vmul.f32 %v2536_v5, %v1215_v22  ;;  %v1333_v37 = vand.u32 2147483648, %v2635_v43  ;;  %v1398_v15 = vrot.slane %v1397_v11, 2  ;;  %vm1328_vm6 = vweird.f32 %v1636_v28 }
 0x215   :  { %v1325_v45 = vmul.f32 %v1636_v28, %v1324_v27  ;;  %v1331_v30 = vand.u32 2147483647, %v2635_v43  ;;  %v1439_v32 = vadd.f32 %v1438_v41, %v1437_v7  ;;  %v1412_v40 = vrot.slane %v1411_v0, 2 }
 0x216   :  { %v1420_v46 = vadd.f32 %v1419_v13, %v1418_v26  ;;  %v1344_v12 = vmul.f32 %v1651_v55, %v1216_v8  ;;  %v1446_v29 = vadd.f32 %v1445_v20, %v1444_v19  ;;  %v1426_v34 = vrot.slane %v1425_v58, 2  ;;  %v1652_v26 = vld [vmem:[#allocation2 + $0x78] sm:$0xff] }
 0x217   :  { %v1326_v9 = vadd.f32 %v1636_v28, %v1325_v45  ;;  %vm1327_vm7 = vweird.f32 %v2635_v43  ;;  %v1453_v49 = vadd.f32 %v1452_v25, %v1451_v14  ;;  %v1334_v5 = vor.u32 1.1754944e-38, %v1333_v37 }
 0x218   :  { %vm1329_vm8 = vmor %vm1327_vm7, %vm1328_vm6  ;;  %v1399_v31 = vadd.f32 %v1398_v15, %v1397_v11  ;;  %v1402_v52 = vsel %vm74_vm0, %v1344_v12, 0.0  ;;  %v1433_v54 = vrot.slane %v1432_v2, 2  ;;  %vm1332_vm10 = vcmp.eq.f32.partialorder %v1331_v30, 8.507059e+37 }
 0x219   :  { %v1330_v51 = vsel %vm1329_vm8, %v1636_v28, %v1326_v9  ;;  %v1403_v6 = vrot.slane %v1402_v52, 4  ;;  %v1440_v42 = vrot.slane %v1439_v32, 2  ;;  %v1413_v38 = vadd.f32 %v1412_v40, %v1411_v0 }
 0x21a   :  { %v1335_v59 = vsel %vm1332_vm10, %v1334_v5, %v1330_v51  ;;  %v1393_v35 = vrot.slane %v2658_v21, 1  ;;  %v1447_v33 = vrot.slane %v1446_v29, 2  ;;  %v1427_v43 = vadd.f32 %v1426_v34, %v1425_v58 }
 0x21b   :  { %v1336_v18 = vmul.f32 %v2585_v56, %v1335_v59  ;;  %v1404_v63 = vadd.f32 %v1403_v6, %v1402_v52  ;;  %v1454_v57 = vrot.slane %v1453_v49, 2  ;;  %v1387_v4 = vadd.f32 %v1386_v36, %v2477_v47 }
 0x21c   :  { %v1400_v50 = vrot.slane %v1399_v31, 1  ;;  %v1434_v60 = vadd.f32 %v1433_v54, %v1432_v2  ;;  %v1486_v3 = vsel %vm1485_vm4, %v2642_v62, %v2650_v17  ;;  %v1421_v10 = vrot.slane %v1420_v46, 1 }
 0x21d   :  { %v1352_v61 = vmul.f32 %v1652_v26, %v1336_v18  ;;  %v1405_v44 = vrot.slane %v1404_v63, 2  ;;  %v1441_v16 = vadd.f32 %v1440_v42, %v1439_v32  ;;  %v1394_v56 = vadd.f32 %v1393_v35, %v2658_v21 }
 0x21e   :  { %v1414_v7 = vrot.slane %v1413_v38, 1  ;;  %v1448_v48 = vadd.f32 %v1447_v33, %v1446_v29  ;;  %vm1487_vm12 = vcmask 1044484   ;;  %v1428_v19 = vrot.slane %v1427_v43, 1 }
 0x21f   :  { %v1406_v11 = vadd.f32 %v1405_v44, %v1404_v63  ;;  %v1455_v28 = vadd.f32 %v1454_v57, %v1453_v49  ;;  %v1458_v47 = vsel %vm74_vm0, %v1352_v61, 0.0  ;;  %v1401_v36 = vadd.f32 %v1400_v50, %v1399_v31 }
 0x220   :  { %v1435_v53 = vrot.slane %v1434_v60, 1  ;;  %v1459_v23 = vrot.slane %v1458_v47, 4  ;;  %vm1489_vm13 = vcmask 1045509   ;;  %v1422_v17 = vadd.f32 %v1421_v10, %v1420_v46 }
 0x221   :  { %v1407_v62 = vrot.slane %v1406_v11, 1  ;;  %v1442_v14 = vrot.slane %v1441_v16, 1  ;;  %vm1491_vm14 = vcmask 1046534   ;;  %v1449_v0 = vrot.slane %v1448_v48, 1 }
 0x222   :  { %v1460_v39 = vadd.f32 %v1459_v23, %v1458_v47  ;;  %v1488_v21 = vsel %vm1487_vm12, %v1387_v4, %v1486_v3  ;;  %vm1493_vm15 = vcmask 1047559   ;;  %v1429_v41 = vadd.f32 %v1428_v19, %v1427_v43 }
 0x223   :  { %v1408_v1 = vadd.f32 %v1407_v62, %v1406_v11  ;;  %v1456_v13 = vrot.slane %v1455_v28, 1  ;;  %v1490_v24 = vsel %vm1489_vm13, %v1394_v56, %v1488_v21  ;;  %v1415_v20 = vadd.f32 %v1414_v7, %v1413_v38 }
 0x224   :  { %v1436_v58 = vadd.f32 %v1435_v53, %v1434_v60  ;;  %v1461_v22 = vrot.slane %v1460_v39, 2  ;;  %v1492_v27 = vsel %vm1491_vm14, %v1401_v36, %v1490_v24  ;;  %v1443_v25 = vadd.f32 %v1442_v14, %v1441_v16 }
 0x225   :  { %v1494_v2 = vsel %vm1493_vm15, %v1408_v1, %v1492_v27  ;;  %v1450_v8 = vadd.f32 %v1449_v0, %v1448_v48  ;;  %v1495_v15 = vsel %vm1481_vm11, %v1422_v17, %v1415_v20  ;;  %v1457_v45 = vadd.f32 %v1456_v13, %v1455_v28 }
 0x226   :  { %v1462_v37 = vadd.f32 %v1461_v22, %v1460_v39  ;;  %1504 = vst.msk [vmem:[#allocation7] sm:$0xff] %vm74_vm0, %v1494_v2  ;;  %v1496_v30 = vsel %vm1483_vm9, %v1429_v41, %v1495_v15 }
 0x227   :  { %v1497_v40 = vsel %vm1485_vm4, %v1436_v58, %v1496_v30 }
 0x228   :  { %v1463_v32 = vrot.slane %v1462_v37, 1  ;;  %v1498_v46 = vsel %vm1487_vm12, %v1443_v25, %v1497_v40 }
 0x229   :  { %v1499_v12 = vsel %vm1489_vm13, %v1450_v8, %v1498_v46 }
 0x22a   :  { %v1464_v55 = vadd.f32 %v1463_v32, %v1462_v37  ;;  %v1500_v29 = vsel %vm1491_vm14, %v1457_v45, %v1499_v12 }
 0x22c   :  { %v1501_v34 = vsel %vm1493_vm15, %v1464_v55, %v1500_v29 }
 0x22d   :  { %1505 = vst.msk [vmem:[#allocation7 + $0x8] sm:$0xff] %vm74_vm0, %v1501_v34 }
 0x22e   :  { %1518 = dma.vmem_to_hbm [thread:$0]  %s1511_s28, 256, %s1513_s5, [#allocation4], %s1732_s23, %s1732_s23, %s1733_s24  }
 0x22f   :  { %1729 = dma.done.wait [#allocation4], 256  }
 0x230   :  { %1730 = vsyncadd [#allocation4], 4294967040 }
 0x231   :  { %1523 = vsyncpa [#allocation3], 1 }
 0x232   :  { %1524 = vsyncpa [#allocation6], 1 }
 0x233   :  { %1525 = vsyncpa [#allocation4], 1 }

</bundles_post_ra>
